<compile_context>
chip_gen: v7x
topology: tpu7x:2x2x1
jax: 0.10.0
libtpu: 0.0.40
codegen_flags: <defaults>
</compile_context>

<pallas_src>
import functools

import jax
import jax.numpy as jnp
from jax.experimental import pallas as pl
from jax.experimental.pallas import tpu as pltpu


def _round_up(x, m):
    return ((x + m - 1) // m) * m


def _pick_batch_tile(bp):
    # Feed v7x's second TensorCore via a parallel batch-tile axis when the
    # (sublane-padded) batch splits into two aligned halves; otherwise keep
    # the whole batch in one tile (better MXU row utilization for small B).
    if bp >= 16 and (bp // 2) % 8 == 0:
        return bp // 2
    return bp


def _gru_chunk_kernel(gi_ref, whh_ref, bhn_ref, out_ref, h_scratch, *, chunk, hp):
    """One grid step = `chunk` GRU timesteps for one batch tile.

    gi_ref:    (chunk, tb, 3*Hp) bf16 precomputed input projections, packed as
               [r | z | n] along the lane axis.  r/z columns already contain
               b_ih_r + b_hh_r / b_ih_z + b_hh_z; n columns contain b_ih_n only.
    whh_ref:   (Hp, 3*Hp) bf16 hidden->hidden weights, packed [r | z | n],
               transposed for `h @ W`.  Constant index_map => stays resident.
    bhn_ref:   (1, Hp) f32 b_hh_n (broadcast over batch rows in-kernel).
    out_ref:   (chunk, tb, Hp) f32 GRU outputs for this chunk (time-major).
    h_scratch: (tb, Hp) f32 hidden state carried across time-chunk grid steps.
    """
    c = pl.program_id(1)   # time-chunk index (axis 0 is the parallel batch tile)

    @pl.when(c == 0)
    def _():
        h_scratch[...] = jnp.zeros_like(h_scratch)

    # Hoist constant weight / bias reads out of the time loop.
    whh = whh_ref[...]                        # (Hp, 3*Hp) bf16
    b_hn = bhn_ref[...].astype(jnp.float32)   # (1, Hp) -> broadcasts over rows

    def step(tau, h):
        # Single fused recurrent GEMM for all three gates (bf16 in, f32 acc).
        gh = jnp.dot(h.astype(whh.dtype), whh,
                     preferred_element_type=jnp.float32)        # (tb, 3*Hp)
        gi = gi_ref[tau].astype(jnp.float32)                    # (tb, 3*Hp)
        r = jax.nn.sigmoid(gi[:, 0:hp] + gh[:, 0:hp])
        z = jax.nn.sigmoid(gi[:, hp:2 * hp] + gh[:, hp:2 * hp])
        n = jnp.tanh(gi[:, 2 * hp:3 * hp] + r * (gh[:, 2 * hp:3 * hp] + b_hn))
        h_new = (1.0 - z) * n + z * h
        out_ref[tau] = h_new.astype(out_ref.dtype)
        return h_new

    unroll = chunk if chunk <= 8 else 8
    h_scratch[...] = jax.lax.fori_loop(0, chunk, step, h_scratch[...],
                                       unroll=unroll)


def gru_forward_pallas(gi, whh_packed, b_hn, *, chunk=None):
    """gi: (S, Bp, 3*Hp) bf16; whh_packed: (Hp, 3*Hp) bf16; b_hn: (1, Hp) f32.

    Returns time-major GRU outputs (S, Bp, Hp) f32.
    """
    S, Bp, three_hp = gi.shape
    Hp = three_hp // 3
    assert Hp % 128 == 0 and Bp % 8 == 0

    tb = _pick_batch_tile(Bp)
    n_btiles = Bp // tb

    # Size the time-chunk from an explicit VMEM budget (portable across
    # v5e 16 MiB default-scoped / v6e 128 MiB / v7x 64 MiB physical VMEM).
    vmem_limit = 48 * 1024 * 1024
    if chunk is None:
        resident = (2 * Hp * three_hp * whh_packed.dtype.itemsize   # W_hh buffers
                    + 2 * Hp * b_hn.dtype.itemsize                  # b_hh_n buffers
                    + tb * Hp * 4)                                  # h scratch
        per_step = (2 * tb * three_hp * gi.dtype.itemsize           # gi (double-buffered)
                    + 2 * tb * Hp * 4)                              # out (double-buffered)
        budget = int(vmem_limit * 0.75)
        avail = max(budget - resident, per_step)
        chunk = int(max(1, min(S, avail // per_step, 256)))

    n_chunks = pl.cdiv(S, chunk)
    S_pad = n_chunks * chunk
    if S_pad != S:
        gi = jnp.pad(gi, ((0, S_pad - S), (0, 0), (0, 0)))

    kernel = functools.partial(_gru_chunk_kernel, chunk=chunk, hp=Hp)

    out_sbh = pl.pallas_call(
        kernel,
        out_shape=jax.ShapeDtypeStruct((S_pad, Bp, Hp), jnp.float32),
        grid_spec=pltpu.PrefetchScalarGridSpec(
            num_scalar_prefetch=0,
            grid=(n_btiles, n_chunks),
            in_specs=[
                pl.BlockSpec((chunk, tb, three_hp), lambda b, c: (c, b, 0)),  # gi packed
                pl.BlockSpec((Hp, three_hp), lambda b, c: (0, 0)),            # W_hh packed
                pl.BlockSpec((1, Hp), lambda b, c: (0, 0)),                   # b_hh_n
            ],
            out_specs=pl.BlockSpec((chunk, tb, Hp), lambda b, c: (c, b, 0)),
            scratch_shapes=[pltpu.VMEM((tb, Hp), jnp.float32)],
        ),
        compiler_params=pltpu.CompilerParams(
            dimension_semantics=("parallel", "arbitrary"),  # batch parallel, time serial
            vmem_limit_bytes=vmem_limit,
        ),
    )(gi, whh_packed, b_hn)
    return out_sbh[:S]


def sw_encoder_forward(input_ids, emb_table, w_ih, w_hh, b_ih, b_hh):
    """Mirrors swEncoder.forward.

    input_ids: (B, S) int32 token ids (batch_first, like the PyTorch module).
    emb_table: (sword_size, H) pretrained embedding (GRU input size == H).
    w_ih, w_hh: (3H, H); b_ih, b_hh: (3H,)  -- PyTorch GRU parameter layout.
    Returns (outputs (B, S, H), hidden (num_layers=1, B, H)).
    """
    B, S = input_ids.shape
    H = emb_table.shape[1]
    Hp = _round_up(H, 128)   # lane-dense hidden dim (padded lanes stay zero)
    Bp = _round_up(B, 8)     # sublane-aligned batch

    emb_table = jnp.asarray(emb_table, jnp.float32)
    w_ih = jnp.asarray(w_ih, jnp.float32)
    w_hh = jnp.asarray(w_hh, jnp.float32)
    b_ih = jnp.asarray(b_ih, jnp.float32)
    b_hh = jnp.asarray(b_hh, jnp.float32)

    # Embedding gather directly into time-major layout; pad batch & hidden.
    emb = jnp.take(emb_table, input_ids.T, axis=0)              # (S, B, H)
    emb = jnp.pad(emb, ((0, 0), (0, Bp - B), (0, Hp - H)))      # (S, Bp, Hp)

    def pad_gate_w(w):   # (H_out, H_in) -> (Hp, Hp), transposed for x @ W
        return jnp.pad(w.T, ((0, Hp - H), (0, Hp - H)))

    def pad_vec(v):
        return jnp.pad(v, (0, Hp - H))

    # Packed per-gate weights: columns [r | z | n], each Hp wide.
    wih_packed = jnp.concatenate(
        [pad_gate_w(w_ih[g * H:(g + 1) * H]) for g in range(3)], axis=1)  # (Hp, 3Hp)
    whh_packed = jnp.concatenate(
        [pad_gate_w(w_hh[g * H:(g + 1) * H]) for g in range(3)], axis=1
    ).astype(jnp.bfloat16)                                                # (Hp, 3Hp)

    bias_packed = jnp.concatenate([
        pad_vec(b_ih[0:H] + b_hh[0:H]),           # r: b_ih_r + b_hh_r
        pad_vec(b_ih[H:2 * H] + b_hh[H:2 * H]),   # z: b_ih_z + b_hh_z
        pad_vec(b_ih[2 * H:3 * H]),               # n: b_ih_n only (b_hh_n stays in r*(...))
    ])                                            # (3Hp,)

    # Hoisted input projection: one big MXU GEMM for all timesteps,
    # written back once as a single packed bf16 stream.
    gi = emb.reshape(S * Bp, Hp) @ wih_packed + bias_packed
    gi = gi.reshape(S, Bp, 3 * Hp).astype(jnp.bfloat16)

    b_hn = pad_vec(b_hh[2 * H:3 * H]).reshape(1, Hp)            # f32

    out_sbh = gru_forward_pallas(gi, whh_packed, b_hn)          # (S, Bp, Hp) f32
    out_sbh = out_sbh[:, :B, :H]                                # drop padding

    outputs = jnp.transpose(out_sbh, (1, 0, 2))                 # (B, S, H) batch_first
    hidden = out_sbh[S - 1][None]                               # (1, B, H)
    return outputs, hidden


def _gru_reference(input_ids, emb_table, w_ih, w_hh, b_ih, b_hh):
    """Pure-JAX f32 reference matching torch.nn.GRU (batch_first, h0 = 0)."""
    H = emb_table.shape[1]
    emb = jnp.take(jnp.asarray(emb_table, jnp.float32), input_ids, axis=0)  # (B,S,H)
    w_ih = jnp.asarray(w_ih, jnp.float32)
    w_hh = jnp.asarray(w_hh, jnp.float32)
    b_ih = jnp.asarray(b_ih, jnp.float32)
    b_hh = jnp.asarray(b_hh, jnp.float32)

    def step(h, x_t):
        gi = x_t @ w_ih.T + b_ih
        gh = h @ w_hh.T + b_hh
        r = jax.nn.sigmoid(gi[:, 0:H] + gh[:, 0:H])
        z = jax.nn.sigmoid(gi[:, H:2 * H] + gh[:, H:2 * H])
        n = jnp.tanh(gi[:, 2 * H:] + r * gh[:, 2 * H:])
        h_new = (1.0 - z) * n + z * h
        return h_new, h_new

    h0 = jnp.zeros((input_ids.shape[0], H), jnp.float32)
    h_last, outs = jax.lax.scan(step, h0, jnp.transpose(emb, (1, 0, 2)))
    return jnp.transpose(outs, (1, 0, 2)), h_last[None]


if __name__ == "__main__":
    # Small deterministic config consistent with the module:
    # hidden_size = 32, sword_size (vocab) = 16, embedding dim = hidden_size
    # (GRU input size is hidden_size, so sword2vec must be (sword_size, hidden)).
    hidden_size = 32
    sword_size = 16
    batch = 2
    seq_len = 8
    num_layers = 1  # module default

    key = jax.random.PRNGKey(0)
    k_emb, k_wih, k_whh, k_bih, k_bhh, k_ids = jax.random.split(key, 6)

    # PyTorch GRU init: U(-1/sqrt(H), 1/sqrt(H)).
    bound = 1.0 / jnp.sqrt(jnp.float32(hidden_size))
    emb_table = jax.random.normal(k_emb, (sword_size, hidden_size), jnp.float32)
    w_ih = jax.random.uniform(k_wih, (3 * hidden_size, hidden_size), jnp.float32,
                              -bound, bound)
    w_hh = jax.random.uniform(k_whh, (3 * hidden_size, hidden_size), jnp.float32,
                              -bound, bound)
    b_ih = jax.random.uniform(k_bih, (3 * hidden_size,), jnp.float32, -bound, bound)
    b_hh = jax.random.uniform(k_bhh, (3 * hidden_size,), jnp.float32, -bound, bound)

    input_ids = jax.random.randint(k_ids, (batch, seq_len), 0, sword_size,
                                   dtype=jnp.int32)

    outputs, hidden = jax.jit(sw_encoder_forward)(
        input_ids, emb_table, w_ih, w_hh, b_ih, b_hh)
    jax.block_until_ready((outputs, hidden))

    assert outputs.shape == (batch, seq_len, hidden_size)
    assert hidden.shape == (num_layers, batch, hidden_size)
    # torch.nn.GRU semantics: final hidden == last output step.
    assert jnp.allclose(outputs[:, -1, :], hidden[0], atol=1e-5)

    # Pure-JAX f32 reference check (bf16 streaming gives ~1e-2-level tolerance).
    ref_out, ref_hidden = _gru_reference(input_ids, emb_table, w_ih, w_hh, b_ih, b_hh)
    assert jnp.allclose(outputs, ref_out, atol=5e-2)
    assert jnp.allclose(hidden, ref_hidden, atol=5e-2)

    print("KERNEL_OK")
</pallas_src>

<mosaic_0001>
module attributes {stable_mosaic.version = 11 : i64} {
  func.func @_gru_chunk_kernel(%arg0: i32, %arg1: i32, %arg2: memref<8x8x384xbf16, #tpu.memory_space<vmem>>, %arg3: memref<128x384xbf16, #tpu.memory_space<vmem>>, %arg4: memref<1x128xf32, #tpu.memory_space<vmem>>, %arg5: memref<8x8x128xf32, #tpu.memory_space<vmem>>, %arg6: memref<8x128xf32, #tpu.memory_space<vmem>>) attributes {dimension_semantics = [#tpu.dimension_semantics<parallel>, #tpu.dimension_semantics<arbitrary>], iteration_bounds = array<i64: 1, 1>, scalar_prefetch = 0 : i64, scratch_operands = 1 : i64, tpu.core_type = #tpu.core_type<tc>, window_params = [{transform_indices = @transform_0, window_bounds = array<i64: 8, 8, 384>}, {pipeline_mode = #tpu.pipeline_mode<synchronous>, transform_indices = @transform_1, window_bounds = array<i64: 128, 384>}, {pipeline_mode = #tpu.pipeline_mode<synchronous>, transform_indices = @transform_2, window_bounds = array<i64: 1, 128>}, {transform_indices = @transform_3, window_bounds = array<i64: 8, 8, 128>}]} {
    %c0_i32 = arith.constant 0 : i32
    %0 = arith.cmpi eq, %arg1, %c0_i32 : i32
    %1 = arith.extui %0 : i1 to i32
    %c0_i32_0 = arith.constant 0 : i32
    %2 = arith.cmpi ne, %1, %c0_i32_0 : i32
    scf.if %2 {
      %cst_72 = arith.constant 0.000000e+00 : f32
      %311 = vector.broadcast %cst_72 : f32 to vector<8x128xf32>
      %c0_73 = arith.constant 0 : index
      %c0_74 = arith.constant 0 : index
      %312 = vector.load %arg6[%c0_73, %c0_74] : memref<8x128xf32, #tpu.memory_space<vmem>>, vector<8x128xf32>
      tpu.vector_store %arg6[%c0_73, %c0_74], %311 {strides = array<i32>} : memref<8x128xf32, #tpu.memory_space<vmem>>, vector<8x128xf32>,
    } else {
    }
    %c0 = arith.constant 0 : index
    %c0_1 = arith.constant 0 : index
    %3 = vector.load %arg3[%c0, %c0_1] : memref<128x384xbf16, #tpu.memory_space<vmem>>, vector<128x384xbf16>
    %c0_2 = arith.constant 0 : index
    %c0_3 = arith.constant 0 : index
    %4 = vector.load %arg4[%c0_2, %c0_3] : memref<1x128xf32, #tpu.memory_space<vmem>>, vector<1x128xf32>
    %c0_4 = arith.constant 0 : index
    %c0_5 = arith.constant 0 : index
    %5 = vector.load %arg6[%c0_4, %c0_5] : memref<8x128xf32, #tpu.memory_space<vmem>>, vector<8x128xf32>
    %c0_i32_6 = arith.constant 0 : i32
    %6 = arith.truncf %5 : vector<8x128xf32> to vector<8x128xbf16>
    %cst = arith.constant dense<0.000000e+00> : vector<8x384xf32>
    %7 = tpu.matmul %6, %3, %cst {dimension_numbers = #tpu.dot_dimension_numbers<[1], [0], [0], [1], [0, 0, 1, 1], [], []>} : vector<8x128xbf16>, vector<128x384xbf16>, vector<8x384xf32> -> vector<8x384xf32>
    %8 = arith.index_cast %c0_i32_6 : i32 to index
    %c0_7 = arith.constant 0 : index
    %c0_8 = arith.constant 0 : index
    %9 = vector.load %arg2[%8, %c0_7, %c0_8] : memref<8x8x384xbf16, #tpu.memory_space<vmem>>, vector<1x8x384xbf16>
    %10 = vector.shape_cast %9 : vector<1x8x384xbf16> to vector<8x384xbf16>
    %11 = arith.extf %10 : vector<8x384xbf16> to vector<8x384xf32>
    %12 = vector.extract_strided_slice %11 {offsets = [0, 0], sizes = [8, 128], strides = [1, 1]} : vector<8x384xf32> to vector<8x128xf32>
    %13 = vector.extract_strided_slice %7 {offsets = [0, 0], sizes = [8, 128], strides = [1, 1]} : vector<8x384xf32> to vector<8x128xf32>
    %14 = arith.addf %12, %13 : vector<8x128xf32>
    %15 = arith.negf %14 : vector<8x128xf32>
    %16 = math.exp %15 : vector<8x128xf32>
    %cst_9 = arith.constant 1.000000e+00 : f32
    %17 = vector.broadcast %cst_9 : f32 to vector<8x128xf32>
    %18 = arith.addf %17, %16 : vector<8x128xf32>
    %19 = arith.divf %17, %18 : vector<8x128xf32>
    %20 = vector.extract_strided_slice %11 {offsets = [0, 128], sizes = [8, 128], strides = [1, 1]} : vector<8x384xf32> to vector<8x128xf32>
    %21 = vector.extract_strided_slice %7 {offsets = [0, 128], sizes = [8, 128], strides = [1, 1]} : vector<8x384xf32> to vector<8x128xf32>
    %22 = arith.addf %20, %21 : vector<8x128xf32>
    %23 = arith.negf %22 : vector<8x128xf32>
    %24 = math.exp %23 : vector<8x128xf32>
    %cst_10 = arith.constant 1.000000e+00 : f32
    %25 = vector.broadcast %cst_10 : f32 to vector<8x128xf32>
    %26 = arith.addf %25, %24 : vector<8x128xf32>
    %27 = arith.divf %25, %26 : vector<8x128xf32>
    %28 = vector.extract_strided_slice %11 {offsets = [0, 256], sizes = [8, 128], strides = [1, 1]} : vector<8x384xf32> to vector<8x128xf32>
    %29 = vector.extract_strided_slice %7 {offsets = [0, 256], sizes = [8, 128], strides = [1, 1]} : vector<8x384xf32> to vector<8x128xf32>
    %30 = vector.broadcast %4 : vector<1x128xf32> to vector<8x128xf32>
    %31 = arith.addf %29, %30 : vector<8x128xf32>
    %32 = arith.mulf %19, %31 : vector<8x128xf32>
    %33 = arith.addf %28, %32 : vector<8x128xf32>
    %34 = math.tanh %33 : vector<8x128xf32>
    %cst_11 = arith.constant 1.000000e+00 : f32
    %35 = vector.broadcast %cst_11 : f32 to vector<8x128xf32>
    %36 = arith.subf %35, %27 : vector<8x128xf32>
    %37 = arith.mulf %36, %34 : vector<8x128xf32>
    %38 = arith.mulf %27, %5 : vector<8x128xf32>
    %39 = arith.addf %37, %38 : vector<8x128xf32>
    %40 = arith.index_cast %c0_i32_6 : i32 to index
    %c0_12 = arith.constant 0 : index
    %c0_13 = arith.constant 0 : index
    %41 = vector.load %arg5[%40, %c0_12, %c0_13] : memref<8x8x128xf32, #tpu.memory_space<vmem>>, vector<1x8x128xf32>
    %42 = vector.shape_cast %41 : vector<1x8x128xf32> to vector<8x128xf32>
    %43 = vector.shape_cast %39 : vector<8x128xf32> to vector<1x8x128xf32>
    tpu.vector_store %arg5[%40, %c0_12, %c0_13], %43 {strides = array<i32>} : memref<8x8x128xf32, #tpu.memory_space<vmem>>, vector<1x8x128xf32>,
    %c1_i32 = arith.constant 1 : i32
    %44 = arith.truncf %39 : vector<8x128xf32> to vector<8x128xbf16>
    %cst_14 = arith.constant dense<0.000000e+00> : vector<8x384xf32>
    %45 = tpu.matmul %44, %3, %cst_14 {dimension_numbers = #tpu.dot_dimension_numbers<[1], [0], [0], [1], [0, 0, 1, 1], [], []>} : vector<8x128xbf16>, vector<128x384xbf16>, vector<8x384xf32> -> vector<8x384xf32>
    %46 = arith.index_cast %c1_i32 : i32 to index
    %c0_15 = arith.constant 0 : index
    %c0_16 = arith.constant 0 : index
    %47 = vector.load %arg2[%46, %c0_15, %c0_16] : memref<8x8x384xbf16, #tpu.memory_space<vmem>>, vector<1x8x384xbf16>
    %48 = vector.shape_cast %47 : vector<1x8x384xbf16> to vector<8x384xbf16>
    %49 = arith.extf %48 : vector<8x384xbf16> to vector<8x384xf32>
    %50 = vector.extract_strided_slice %49 {offsets = [0, 0], sizes = [8, 128], strides = [1, 1]} : vector<8x384xf32> to vector<8x128xf32>
    %51 = vector.extract_strided_slice %45 {offsets = [0, 0], sizes = [8, 128], strides = [1, 1]} : vector<8x384xf32> to vector<8x128xf32>
    %52 = arith.addf %50, %51 : vector<8x128xf32>
    %53 = arith.negf %52 : vector<8x128xf32>
    %54 = math.exp %53 : vector<8x128xf32>
    %cst_17 = arith.constant 1.000000e+00 : f32
    %55 = vector.broadcast %cst_17 : f32 to vector<8x128xf32>
    %56 = arith.addf %55, %54 : vector<8x128xf32>
    %57 = arith.divf %55, %56 : vector<8x128xf32>
    %58 = vector.extract_strided_slice %49 {offsets = [0, 128], sizes = [8, 128], strides = [1, 1]} : vector<8x384xf32> to vector<8x128xf32>
    %59 = vector.extract_strided_slice %45 {offsets = [0, 128], sizes = [8, 128], strides = [1, 1]} : vector<8x384xf32> to vector<8x128xf32>
    %60 = arith.addf %58, %59 : vector<8x128xf32>
    %61 = arith.negf %60 : vector<8x128xf32>
    %62 = math.exp %61 : vector<8x128xf32>
    %cst_18 = arith.constant 1.000000e+00 : f32
    %63 = vector.broadcast %cst_18 : f32 to vector<8x128xf32>
    %64 = arith.addf %63, %62 : vector<8x128xf32>
    %65 = arith.divf %63, %64 : vector<8x128xf32>
    %66 = vector.extract_strided_slice %49 {offsets = [0, 256], sizes = [8, 128], strides = [1, 1]} : vector<8x384xf32> to vector<8x128xf32>
    %67 = vector.extract_strided_slice %45 {offsets = [0, 256], sizes = [8, 128], strides = [1, 1]} : vector<8x384xf32> to vector<8x128xf32>
    %68 = vector.broadcast %4 : vector<1x128xf32> to vector<8x128xf32>
    %69 = arith.addf %67, %68 : vector<8x128xf32>
    %70 = arith.mulf %57, %69 : vector<8x128xf32>
    %71 = arith.addf %66, %70 : vector<8x128xf32>
    %72 = math.tanh %71 : vector<8x128xf32>
    %cst_19 = arith.constant 1.000000e+00 : f32
    %73 = vector.broadcast %cst_19 : f32 to vector<8x128xf32>
    %74 = arith.subf %73, %65 : vector<8x128xf32>
    %75 = arith.mulf %74, %72 : vector<8x128xf32>
    %76 = arith.mulf %65, %39 : vector<8x128xf32>
    %77 = arith.addf %75, %76 : vector<8x128xf32>
    %78 = arith.index_cast %c1_i32 : i32 to index
    %c0_20 = arith.constant 0 : index
    %c0_21 = arith.constant 0 : index
    %79 = vector.load %arg5[%78, %c0_20, %c0_21] : memref<8x8x128xf32, #tpu.memory_space<vmem>>, vector<1x8x128xf32>
    %80 = vector.shape_cast %79 : vector<1x8x128xf32> to vector<8x128xf32>
    %81 = vector.shape_cast %77 : vector<8x128xf32> to vector<1x8x128xf32>
    tpu.vector_store %arg5[%78, %c0_20, %c0_21], %81 {strides = array<i32>} : memref<8x8x128xf32, #tpu.memory_space<vmem>>, vector<1x8x128xf32>,
    %c2_i32 = arith.constant 2 : i32
    %82 = arith.truncf %77 : vector<8x128xf32> to vector<8x128xbf16>
    %cst_22 = arith.constant dense<0.000000e+00> : vector<8x384xf32>
    %83 = tpu.matmul %82, %3, %cst_22 {dimension_numbers = #tpu.dot_dimension_numbers<[1], [0], [0], [1], [0, 0, 1, 1], [], []>} : vector<8x128xbf16>, vector<128x384xbf16>, vector<8x384xf32> -> vector<8x384xf32>
    %84 = arith.index_cast %c2_i32 : i32 to index
    %c0_23 = arith.constant 0 : index
    %c0_24 = arith.constant 0 : index
    %85 = vector.load %arg2[%84, %c0_23, %c0_24] : memref<8x8x384xbf16, #tpu.memory_space<vmem>>, vector<1x8x384xbf16>
    %86 = vector.shape_cast %85 : vector<1x8x384xbf16> to vector<8x384xbf16>
    %87 = arith.extf %86 : vector<8x384xbf16> to vector<8x384xf32>
    %88 = vector.extract_strided_slice %87 {offsets = [0, 0], sizes = [8, 128], strides = [1, 1]} : vector<8x384xf32> to vector<8x128xf32>
    %89 = vector.extract_strided_slice %83 {offsets = [0, 0], sizes = [8, 128], strides = [1, 1]} : vector<8x384xf32> to vector<8x128xf32>
    %90 = arith.addf %88, %89 : vector<8x128xf32>
    %91 = arith.negf %90 : vector<8x128xf32>
    %92 = math.exp %91 : vector<8x128xf32>
    %cst_25 = arith.constant 1.000000e+00 : f32
    %93 = vector.broadcast %cst_25 : f32 to vector<8x128xf32>
    %94 = arith.addf %93, %92 : vector<8x128xf32>
    %95 = arith.divf %93, %94 : vector<8x128xf32>
    %96 = vector.extract_strided_slice %87 {offsets = [0, 128], sizes = [8, 128], strides = [1, 1]} : vector<8x384xf32> to vector<8x128xf32>
    %97 = vector.extract_strided_slice %83 {offsets = [0, 128], sizes = [8, 128], strides = [1, 1]} : vector<8x384xf32> to vector<8x128xf32>
    %98 = arith.addf %96, %97 : vector<8x128xf32>
    %99 = arith.negf %98 : vector<8x128xf32>
    %100 = math.exp %99 : vector<8x128xf32>
    %cst_26 = arith.constant 1.000000e+00 : f32
    %101 = vector.broadcast %cst_26 : f32 to vector<8x128xf32>
    %102 = arith.addf %101, %100 : vector<8x128xf32>
    %103 = arith.divf %101, %102 : vector<8x128xf32>
    %104 = vector.extract_strided_slice %87 {offsets = [0, 256], sizes = [8, 128], strides = [1, 1]} : vector<8x384xf32> to vector<8x128xf32>
    %105 = vector.extract_strided_slice %83 {offsets = [0, 256], sizes = [8, 128], strides = [1, 1]} : vector<8x384xf32> to vector<8x128xf32>
    %106 = vector.broadcast %4 : vector<1x128xf32> to vector<8x128xf32>
    %107 = arith.addf %105, %106 : vector<8x128xf32>
    %108 = arith.mulf %95, %107 : vector<8x128xf32>
    %109 = arith.addf %104, %108 : vector<8x128xf32>
    %110 = math.tanh %109 : vector<8x128xf32>
    %cst_27 = arith.constant 1.000000e+00 : f32
    %111 = vector.broadcast %cst_27 : f32 to vector<8x128xf32>
    %112 = arith.subf %111, %103 : vector<8x128xf32>
    %113 = arith.mulf %112, %110 : vector<8x128xf32>
    %114 = arith.mulf %103, %77 : vector<8x128xf32>
    %115 = arith.addf %113, %114 : vector<8x128xf32>
    %116 = arith.index_cast %c2_i32 : i32 to index
    %c0_28 = arith.constant 0 : index
    %c0_29 = arith.constant 0 : index
    %117 = vector.load %arg5[%116, %c0_28, %c0_29] : memref<8x8x128xf32, #tpu.memory_space<vmem>>, vector<1x8x128xf32>
    %118 = vector.shape_cast %117 : vector<1x8x128xf32> to vector<8x128xf32>
    %119 = vector.shape_cast %115 : vector<8x128xf32> to vector<1x8x128xf32>
    tpu.vector_store %arg5[%116, %c0_28, %c0_29], %119 {strides = array<i32>} : memref<8x8x128xf32, #tpu.memory_space<vmem>>, vector<1x8x128xf32>,
    %c3_i32 = arith.constant 3 : i32
    %120 = arith.truncf %115 : vector<8x128xf32> to vector<8x128xbf16>
    %cst_30 = arith.constant dense<0.000000e+00> : vector<8x384xf32>
    %121 = tpu.matmul %120, %3, %cst_30 {dimension_numbers = #tpu.dot_dimension_numbers<[1], [0], [0], [1], [0, 0, 1, 1], [], []>} : vector<8x128xbf16>, vector<128x384xbf16>, vector<8x384xf32> -> vector<8x384xf32>
    %122 = arith.index_cast %c3_i32 : i32 to index
    %c0_31 = arith.constant 0 : index
    %c0_32 = arith.constant 0 : index
    %123 = vector.load %arg2[%122, %c0_31, %c0_32] : memref<8x8x384xbf16, #tpu.memory_space<vmem>>, vector<1x8x384xbf16>
    %124 = vector.shape_cast %123 : vector<1x8x384xbf16> to vector<8x384xbf16>
    %125 = arith.extf %124 : vector<8x384xbf16> to vector<8x384xf32>
    %126 = vector.extract_strided_slice %125 {offsets = [0, 0], sizes = [8, 128], strides = [1, 1]} : vector<8x384xf32> to vector<8x128xf32>
    %127 = vector.extract_strided_slice %121 {offsets = [0, 0], sizes = [8, 128], strides = [1, 1]} : vector<8x384xf32> to vector<8x128xf32>
    %128 = arith.addf %126, %127 : vector<8x128xf32>
    %129 = arith.negf %128 : vector<8x128xf32>
    %130 = math.exp %129 : vector<8x128xf32>
    %cst_33 = arith.constant 1.000000e+00 : f32
    %131 = vector.broadcast %cst_33 : f32 to vector<8x128xf32>
    %132 = arith.addf %131, %130 : vector<8x128xf32>
    %133 = arith.divf %131, %132 : vector<8x128xf32>
    %134 = vector.extract_strided_slice %125 {offsets = [0, 128], sizes = [8, 128], strides = [1, 1]} : vector<8x384xf32> to vector<8x128xf32>
    %135 = vector.extract_strided_slice %121 {offsets = [0, 128], sizes = [8, 128], strides = [1, 1]} : vector<8x384xf32> to vector<8x128xf32>
    %136 = arith.addf %134, %135 : vector<8x128xf32>
    %137 = arith.negf %136 : vector<8x128xf32>
    %138 = math.exp %137 : vector<8x128xf32>
    %cst_34 = arith.constant 1.000000e+00 : f32
    %139 = vector.broadcast %cst_34 : f32 to vector<8x128xf32>
    %140 = arith.addf %139, %138 : vector<8x128xf32>
    %141 = arith.divf %139, %140 : vector<8x128xf32>
    %142 = vector.extract_strided_slice %125 {offsets = [0, 256], sizes = [8, 128], strides = [1, 1]} : vector<8x384xf32> to vector<8x128xf32>
    %143 = vector.extract_strided_slice %121 {offsets = [0, 256], sizes = [8, 128], strides = [1, 1]} : vector<8x384xf32> to vector<8x128xf32>
    %144 = vector.broadcast %4 : vector<1x128xf32> to vector<8x128xf32>
    %145 = arith.addf %143, %144 : vector<8x128xf32>
    %146 = arith.mulf %133, %145 : vector<8x128xf32>
    %147 = arith.addf %142, %146 : vector<8x128xf32>
    %148 = math.tanh %147 : vector<8x128xf32>
    %cst_35 = arith.constant 1.000000e+00 : f32
    %149 = vector.broadcast %cst_35 : f32 to vector<8x128xf32>
    %150 = arith.subf %149, %141 : vector<8x128xf32>
    %151 = arith.mulf %150, %148 : vector<8x128xf32>
    %152 = arith.mulf %141, %115 : vector<8x128xf32>
    %153 = arith.addf %151, %152 : vector<8x128xf32>
    %154 = arith.index_cast %c3_i32 : i32 to index
    %c0_36 = arith.constant 0 : index
    %c0_37 = arith.constant 0 : index
    %155 = vector.load %arg5[%154, %c0_36, %c0_37] : memref<8x8x128xf32, #tpu.memory_space<vmem>>, vector<1x8x128xf32>
    %156 = vector.shape_cast %155 : vector<1x8x128xf32> to vector<8x128xf32>
    %157 = vector.shape_cast %153 : vector<8x128xf32> to vector<1x8x128xf32>
    tpu.vector_store %arg5[%154, %c0_36, %c0_37], %157 {strides = array<i32>} : memref<8x8x128xf32, #tpu.memory_space<vmem>>, vector<1x8x128xf32>,
    %c4_i32 = arith.constant 4 : i32
    %158 = arith.truncf %153 : vector<8x128xf32> to vector<8x128xbf16>
    %cst_38 = arith.constant dense<0.000000e+00> : vector<8x384xf32>
    %159 = tpu.matmul %158, %3, %cst_38 {dimension_numbers = #tpu.dot_dimension_numbers<[1], [0], [0], [1], [0, 0, 1, 1], [], []>} : vector<8x128xbf16>, vector<128x384xbf16>, vector<8x384xf32> -> vector<8x384xf32>
    %160 = arith.index_cast %c4_i32 : i32 to index
    %c0_39 = arith.constant 0 : index
    %c0_40 = arith.constant 0 : index
    %161 = vector.load %arg2[%160, %c0_39, %c0_40] : memref<8x8x384xbf16, #tpu.memory_space<vmem>>, vector<1x8x384xbf16>
    %162 = vector.shape_cast %161 : vector<1x8x384xbf16> to vector<8x384xbf16>
    %163 = arith.extf %162 : vector<8x384xbf16> to vector<8x384xf32>
    %164 = vector.extract_strided_slice %163 {offsets = [0, 0], sizes = [8, 128], strides = [1, 1]} : vector<8x384xf32> to vector<8x128xf32>
    %165 = vector.extract_strided_slice %159 {offsets = [0, 0], sizes = [8, 128], strides = [1, 1]} : vector<8x384xf32> to vector<8x128xf32>
    %166 = arith.addf %164, %165 : vector<8x128xf32>
    %167 = arith.negf %166 : vector<8x128xf32>
    %168 = math.exp %167 : vector<8x128xf32>
    %cst_41 = arith.constant 1.000000e+00 : f32
    %169 = vector.broadcast %cst_41 : f32 to vector<8x128xf32>
    %170 = arith.addf %169, %168 : vector<8x128xf32>
    %171 = arith.divf %169, %170 : vector<8x128xf32>
    %172 = vector.extract_strided_slice %163 {offsets = [0, 128], sizes = [8, 128], strides = [1, 1]} : vector<8x384xf32> to vector<8x128xf32>
    %173 = vector.extract_strided_slice %159 {offsets = [0, 128], sizes = [8, 128], strides = [1, 1]} : vector<8x384xf32> to vector<8x128xf32>
    %174 = arith.addf %172, %173 : vector<8x128xf32>
    %175 = arith.negf %174 : vector<8x128xf32>
    %176 = math.exp %175 : vector<8x128xf32>
    %cst_42 = arith.constant 1.000000e+00 : f32
    %177 = vector.broadcast %cst_42 : f32 to vector<8x128xf32>
    %178 = arith.addf %177, %176 : vector<8x128xf32>
    %179 = arith.divf %177, %178 : vector<8x128xf32>
    %180 = vector.extract_strided_slice %163 {offsets = [0, 256], sizes = [8, 128], strides = [1, 1]} : vector<8x384xf32> to vector<8x128xf32>
    %181 = vector.extract_strided_slice %159 {offsets = [0, 256], sizes = [8, 128], strides = [1, 1]} : vector<8x384xf32> to vector<8x128xf32>
    %182 = vector.broadcast %4 : vector<1x128xf32> to vector<8x128xf32>
    %183 = arith.addf %181, %182 : vector<8x128xf32>
    %184 = arith.mulf %171, %183 : vector<8x128xf32>
    %185 = arith.addf %180, %184 : vector<8x128xf32>
    %186 = math.tanh %185 : vector<8x128xf32>
    %cst_43 = arith.constant 1.000000e+00 : f32
    %187 = vector.broadcast %cst_43 : f32 to vector<8x128xf32>
    %188 = arith.subf %187, %179 : vector<8x128xf32>
    %189 = arith.mulf %188, %186 : vector<8x128xf32>
    %190 = arith.mulf %179, %153 : vector<8x128xf32>
    %191 = arith.addf %189, %190 : vector<8x128xf32>
    %192 = arith.index_cast %c4_i32 : i32 to index
    %c0_44 = arith.constant 0 : index
    %c0_45 = arith.constant 0 : index
    %193 = vector.load %arg5[%192, %c0_44, %c0_45] : memref<8x8x128xf32, #tpu.memory_space<vmem>>, vector<1x8x128xf32>
    %194 = vector.shape_cast %193 : vector<1x8x128xf32> to vector<8x128xf32>
    %195 = vector.shape_cast %191 : vector<8x128xf32> to vector<1x8x128xf32>
    tpu.vector_store %arg5[%192, %c0_44, %c0_45], %195 {strides = array<i32>} : memref<8x8x128xf32, #tpu.memory_space<vmem>>, vector<1x8x128xf32>,
    %c5_i32 = arith.constant 5 : i32
    %196 = arith.truncf %191 : vector<8x128xf32> to vector<8x128xbf16>
    %cst_46 = arith.constant dense<0.000000e+00> : vector<8x384xf32>
    %197 = tpu.matmul %196, %3, %cst_46 {dimension_numbers = #tpu.dot_dimension_numbers<[1], [0], [0], [1], [0, 0, 1, 1], [], []>} : vector<8x128xbf16>, vector<128x384xbf16>, vector<8x384xf32> -> vector<8x384xf32>
    %198 = arith.index_cast %c5_i32 : i32 to index
    %c0_47 = arith.constant 0 : index
    %c0_48 = arith.constant 0 : index
    %199 = vector.load %arg2[%198, %c0_47, %c0_48] : memref<8x8x384xbf16, #tpu.memory_space<vmem>>, vector<1x8x384xbf16>
    %200 = vector.shape_cast %199 : vector<1x8x384xbf16> to vector<8x384xbf16>
    %201 = arith.extf %200 : vector<8x384xbf16> to vector<8x384xf32>
    %202 = vector.extract_strided_slice %201 {offsets = [0, 0], sizes = [8, 128], strides = [1, 1]} : vector<8x384xf32> to vector<8x128xf32>
    %203 = vector.extract_strided_slice %197 {offsets = [0, 0], sizes = [8, 128], strides = [1, 1]} : vector<8x384xf32> to vector<8x128xf32>
    %204 = arith.addf %202, %203 : vector<8x128xf32>
    %205 = arith.negf %204 : vector<8x128xf32>
    %206 = math.exp %205 : vector<8x128xf32>
    %cst_49 = arith.constant 1.000000e+00 : f32
    %207 = vector.broadcast %cst_49 : f32 to vector<8x128xf32>
    %208 = arith.addf %207, %206 : vector<8x128xf32>
    %209 = arith.divf %207, %208 : vector<8x128xf32>
    %210 = vector.extract_strided_slice %201 {offsets = [0, 128], sizes = [8, 128], strides = [1, 1]} : vector<8x384xf32> to vector<8x128xf32>
    %211 = vector.extract_strided_slice %197 {offsets = [0, 128], sizes = [8, 128], strides = [1, 1]} : vector<8x384xf32> to vector<8x128xf32>
    %212 = arith.addf %210, %211 : vector<8x128xf32>
    %213 = arith.negf %212 : vector<8x128xf32>
    %214 = math.exp %213 : vector<8x128xf32>
    %cst_50 = arith.constant 1.000000e+00 : f32
    %215 = vector.broadcast %cst_50 : f32 to vector<8x128xf32>
    %216 = arith.addf %215, %214 : vector<8x128xf32>
    %217 = arith.divf %215, %216 : vector<8x128xf32>
    %218 = vector.extract_strided_slice %201 {offsets = [0, 256], sizes = [8, 128], strides = [1, 1]} : vector<8x384xf32> to vector<8x128xf32>
    %219 = vector.extract_strided_slice %197 {offsets = [0, 256], sizes = [8, 128], strides = [1, 1]} : vector<8x384xf32> to vector<8x128xf32>
    %220 = vector.broadcast %4 : vector<1x128xf32> to vector<8x128xf32>
    %221 = arith.addf %219, %220 : vector<8x128xf32>
    %222 = arith.mulf %209, %221 : vector<8x128xf32>
    %223 = arith.addf %218, %222 : vector<8x128xf32>
    %224 = math.tanh %223 : vector<8x128xf32>
    %cst_51 = arith.constant 1.000000e+00 : f32
    %225 = vector.broadcast %cst_51 : f32 to vector<8x128xf32>
    %226 = arith.subf %225, %217 : vector<8x128xf32>
    %227 = arith.mulf %226, %224 : vector<8x128xf32>
    %228 = arith.mulf %217, %191 : vector<8x128xf32>
    %229 = arith.addf %227, %228 : vector<8x128xf32>
    %230 = arith.index_cast %c5_i32 : i32 to index
    %c0_52 = arith.constant 0 : index
    %c0_53 = arith.constant 0 : index
    %231 = vector.load %arg5[%230, %c0_52, %c0_53] : memref<8x8x128xf32, #tpu.memory_space<vmem>>, vector<1x8x128xf32>
    %232 = vector.shape_cast %231 : vector<1x8x128xf32> to vector<8x128xf32>
    %233 = vector.shape_cast %229 : vector<8x128xf32> to vector<1x8x128xf32>
    tpu.vector_store %arg5[%230, %c0_52, %c0_53], %233 {strides = array<i32>} : memref<8x8x128xf32, #tpu.memory_space<vmem>>, vector<1x8x128xf32>,
    %c6_i32 = arith.constant 6 : i32
    %234 = arith.truncf %229 : vector<8x128xf32> to vector<8x128xbf16>
    %cst_54 = arith.constant dense<0.000000e+00> : vector<8x384xf32>
    %235 = tpu.matmul %234, %3, %cst_54 {dimension_numbers = #tpu.dot_dimension_numbers<[1], [0], [0], [1], [0, 0, 1, 1], [], []>} : vector<8x128xbf16>, vector<128x384xbf16>, vector<8x384xf32> -> vector<8x384xf32>
    %236 = arith.index_cast %c6_i32 : i32 to index
    %c0_55 = arith.constant 0 : index
    %c0_56 = arith.constant 0 : index
    %237 = vector.load %arg2[%236, %c0_55, %c0_56] : memref<8x8x384xbf16, #tpu.memory_space<vmem>>, vector<1x8x384xbf16>
    %238 = vector.shape_cast %237 : vector<1x8x384xbf16> to vector<8x384xbf16>
    %239 = arith.extf %238 : vector<8x384xbf16> to vector<8x384xf32>
    %240 = vector.extract_strided_slice %239 {offsets = [0, 0], sizes = [8, 128], strides = [1, 1]} : vector<8x384xf32> to vector<8x128xf32>
    %241 = vector.extract_strided_slice %235 {offsets = [0, 0], sizes = [8, 128], strides = [1, 1]} : vector<8x384xf32> to vector<8x128xf32>
    %242 = arith.addf %240, %241 : vector<8x128xf32>
    %243 = arith.negf %242 : vector<8x128xf32>
    %244 = math.exp %243 : vector<8x128xf32>
    %cst_57 = arith.constant 1.000000e+00 : f32
    %245 = vector.broadcast %cst_57 : f32 to vector<8x128xf32>
    %246 = arith.addf %245, %244 : vector<8x128xf32>
    %247 = arith.divf %245, %246 : vector<8x128xf32>
    %248 = vector.extract_strided_slice %239 {offsets = [0, 128], sizes = [8, 128], strides = [1, 1]} : vector<8x384xf32> to vector<8x128xf32>
    %249 = vector.extract_strided_slice %235 {offsets = [0, 128], sizes = [8, 128], strides = [1, 1]} : vector<8x384xf32> to vector<8x128xf32>
    %250 = arith.addf %248, %249 : vector<8x128xf32>
    %251 = arith.negf %250 : vector<8x128xf32>
    %252 = math.exp %251 : vector<8x128xf32>
    %cst_58 = arith.constant 1.000000e+00 : f32
    %253 = vector.broadcast %cst_58 : f32 to vector<8x128xf32>
    %254 = arith.addf %253, %252 : vector<8x128xf32>
    %255 = arith.divf %253, %254 : vector<8x128xf32>
    %256 = vector.extract_strided_slice %239 {offsets = [0, 256], sizes = [8, 128], strides = [1, 1]} : vector<8x384xf32> to vector<8x128xf32>
    %257 = vector.extract_strided_slice %235 {offsets = [0, 256], sizes = [8, 128], strides = [1, 1]} : vector<8x384xf32> to vector<8x128xf32>
    %258 = vector.broadcast %4 : vector<1x128xf32> to vector<8x128xf32>
    %259 = arith.addf %257, %258 : vector<8x128xf32>
    %260 = arith.mulf %247, %259 : vector<8x128xf32>
    %261 = arith.addf %256, %260 : vector<8x128xf32>
    %262 = math.tanh %261 : vector<8x128xf32>
    %cst_59 = arith.constant 1.000000e+00 : f32
    %263 = vector.broadcast %cst_59 : f32 to vector<8x128xf32>
    %264 = arith.subf %263, %255 : vector<8x128xf32>
    %265 = arith.mulf %264, %262 : vector<8x128xf32>
    %266 = arith.mulf %255, %229 : vector<8x128xf32>
    %267 = arith.addf %265, %266 : vector<8x128xf32>
    %268 = arith.index_cast %c6_i32 : i32 to index
    %c0_60 = arith.constant 0 : index
    %c0_61 = arith.constant 0 : index
    %269 = vector.load %arg5[%268, %c0_60, %c0_61] : memref<8x8x128xf32, #tpu.memory_space<vmem>>, vector<1x8x128xf32>
    %270 = vector.shape_cast %269 : vector<1x8x128xf32> to vector<8x128xf32>
    %271 = vector.shape_cast %267 : vector<8x128xf32> to vector<1x8x128xf32>
    tpu.vector_store %arg5[%268, %c0_60, %c0_61], %271 {strides = array<i32>} : memref<8x8x128xf32, #tpu.memory_space<vmem>>, vector<1x8x128xf32>,
    %c7_i32 = arith.constant 7 : i32
    %272 = arith.truncf %267 : vector<8x128xf32> to vector<8x128xbf16>
    %cst_62 = arith.constant dense<0.000000e+00> : vector<8x384xf32>
    %273 = tpu.matmul %272, %3, %cst_62 {dimension_numbers = #tpu.dot_dimension_numbers<[1], [0], [0], [1], [0, 0, 1, 1], [], []>} : vector<8x128xbf16>, vector<128x384xbf16>, vector<8x384xf32> -> vector<8x384xf32>
    %274 = arith.index_cast %c7_i32 : i32 to index
    %c0_63 = arith.constant 0 : index
    %c0_64 = arith.constant 0 : index
    %275 = vector.load %arg2[%274, %c0_63, %c0_64] : memref<8x8x384xbf16, #tpu.memory_space<vmem>>, vector<1x8x384xbf16>
    %276 = vector.shape_cast %275 : vector<1x8x384xbf16> to vector<8x384xbf16>
    %277 = arith.extf %276 : vector<8x384xbf16> to vector<8x384xf32>
    %278 = vector.extract_strided_slice %277 {offsets = [0, 0], sizes = [8, 128], strides = [1, 1]} : vector<8x384xf32> to vector<8x128xf32>
    %279 = vector.extract_strided_slice %273 {offsets = [0, 0], sizes = [8, 128], strides = [1, 1]} : vector<8x384xf32> to vector<8x128xf32>
    %280 = arith.addf %278, %279 : vector<8x128xf32>
    %281 = arith.negf %280 : vector<8x128xf32>
    %282 = math.exp %281 : vector<8x128xf32>
    %cst_65 = arith.constant 1.000000e+00 : f32
    %283 = vector.broadcast %cst_65 : f32 to vector<8x128xf32>
    %284 = arith.addf %283, %282 : vector<8x128xf32>
    %285 = arith.divf %283, %284 : vector<8x128xf32>
    %286 = vector.extract_strided_slice %277 {offsets = [0, 128], sizes = [8, 128], strides = [1, 1]} : vector<8x384xf32> to vector<8x128xf32>
    %287 = vector.extract_strided_slice %273 {offsets = [0, 128], sizes = [8, 128], strides = [1, 1]} : vector<8x384xf32> to vector<8x128xf32>
    %288 = arith.addf %286, %287 : vector<8x128xf32>
    %289 = arith.negf %288 : vector<8x128xf32>
    %290 = math.exp %289 : vector<8x128xf32>
    %cst_66 = arith.constant 1.000000e+00 : f32
    %291 = vector.broadcast %cst_66 : f32 to vector<8x128xf32>
    %292 = arith.addf %291, %290 : vector<8x128xf32>
    %293 = arith.divf %291, %292 : vector<8x128xf32>
    %294 = vector.extract_strided_slice %277 {offsets = [0, 256], sizes = [8, 128], strides = [1, 1]} : vector<8x384xf32> to vector<8x128xf32>
    %295 = vector.extract_strided_slice %273 {offsets = [0, 256], sizes = [8, 128], strides = [1, 1]} : vector<8x384xf32> to vector<8x128xf32>
    %296 = vector.broadcast %4 : vector<1x128xf32> to vector<8x128xf32>
    %297 = arith.addf %295, %296 : vector<8x128xf32>
    %298 = arith.mulf %285, %297 : vector<8x128xf32>
    %299 = arith.addf %294, %298 : vector<8x128xf32>
    %300 = math.tanh %299 : vector<8x128xf32>
    %cst_67 = arith.constant 1.000000e+00 : f32
    %301 = vector.broadcast %cst_67 : f32 to vector<8x128xf32>
    %302 = arith.subf %301, %293 : vector<8x128xf32>
    %303 = arith.mulf %302, %300 : vector<8x128xf32>
    %304 = arith.mulf %293, %267 : vector<8x128xf32>
    %305 = arith.addf %303, %304 : vector<8x128xf32>
    %306 = arith.index_cast %c7_i32 : i32 to index
    %c0_68 = arith.constant 0 : index
    %c0_69 = arith.constant 0 : index
    %307 = vector.load %arg5[%306, %c0_68, %c0_69] : memref<8x8x128xf32, #tpu.memory_space<vmem>>, vector<1x8x128xf32>
    %308 = vector.shape_cast %307 : vector<1x8x128xf32> to vector<8x128xf32>
    %309 = vector.shape_cast %305 : vector<8x128xf32> to vector<1x8x128xf32>
    tpu.vector_store %arg5[%306, %c0_68, %c0_69], %309 {strides = array<i32>} : memref<8x8x128xf32, #tpu.memory_space<vmem>>, vector<1x8x128xf32>,
    %c8_i32 = arith.constant 8 : i32
    %c0_70 = arith.constant 0 : index
    %c0_71 = arith.constant 0 : index
    %310 = vector.load %arg6[%c0_70, %c0_71] : memref<8x128xf32, #tpu.memory_space<vmem>>, vector<8x128xf32>
    tpu.vector_store %arg6[%c0_70, %c0_71], %305 {strides = array<i32>} : memref<8x128xf32, #tpu.memory_space<vmem>>, vector<8x128xf32>,
    return
  }
  func.func @transform_0(%arg0: i32, %arg1: i32) -> (i32, i32, i32) {
    %c0_i32 = arith.constant 0 : i32
    %c0_i32_0 = arith.constant 0 : i32
    return %arg1, %arg0, %c0_i32 : i32, i32, i32
  }
  func.func @transform_1(%arg0: i32, %arg1: i32) -> (i32, i32) {
    %c0_i32 = arith.constant 0 : i32
    %c0_i32_0 = arith.constant 0 : i32
    %c0_i32_1 = arith.constant 0 : i32
    return %c0_i32, %c0_i32_0 : i32, i32
  }
  func.func @transform_2(%arg0: i32, %arg1: i32) -> (i32, i32) {
    %c0_i32 = arith.constant 0 : i32
    %c0_i32_0 = arith.constant 0 : i32
    %c0_i32_1 = arith.constant 0 : i32
    return %c0_i32, %c0_i32_0 : i32, i32
  }
  func.func @transform_3(%arg0: i32, %arg1: i32) -> (i32, i32, i32) {
    %c0_i32 = arith.constant 0 : i32
    %c0_i32_0 = arith.constant 0 : i32
    return %arg1, %arg0, %c0_i32 : i32, i32, i32
  }
}

</mosaic_0001>

<bundles_post_ra>
// kernel: sw_encoder_forward.1
= control target key start
LH: loop header
LB: loop body
LE: loop exit
PB: predicated region body
PF: predicated region fallthrough
CT: control target
= control target key end

     0   :  { %v1506_v1 = vmov 0.0   ;;  %v1507_v2 = vmov 0   ;;  %vm1508_vm0 = vmmov 0   ;;  %v1509_v25 = vmov 0.0|0.0   ;;  %s2072_s1 = inlined_call_operand.vmem [shape: bf16[128,384], index: 1, kind: input, shape index: {}]   ;;  %s2073_s0 = inlined_call_operand.vmem [shape: bf16[8,8,384], index: 0, kind: input, shape index: {}]   ;;  %s2074_s2 = inlined_call_operand.vmem [shape: f32[1,128], index: 2, kind: input, shape index: {}]   ;;  %s2075_s3 = inlined_call_operand.vmem [shape: f32[8,8,128], index: 3, kind: output, shape index: {}]  }
   0x1   :  { %v1533_v0 = vld [vmem:[%s2072_s1 + $0x4] ss:$12 sps:$4 sm:$0xff]   ;;  %1221 = vmatprep.subr.bf16.mxu1 %v1506_v1  ;;  %215 = vmatprep.mubr.bf16.mxu0 %v1507_v2  ;;  %v1540_v3 = vld [vmem:[%s2072_s1] ss:$12 sps:$4 sm:$0xff]   ;;  %v1548_v4 = vld [vmem:[%s2072_s1 + $0x1c] ss:$12 sps:$4 sm:$0xff]  }
   0x2   :  { %1237 = vmatprep.mubr.msk.bf16.mxu1 %vm1508_vm0, %v1506_v1  ;;  %183 = vmatprep.subr.bf16.mxu0 %v1533_v0  ;;  %v1554_v5 = vld [vmem:[%s2072_s1 + $0x18] ss:$12 sps:$4 sm:$0xff]   ;;  %v1560_v6 = vld [vmem:[%s2072_s1 + $0x34] ss:$12 sps:$4 sm:$0xff]   ;;  %v1566_v7 = vld [vmem:[%s2072_s1 + $0x30] ss:$12 sps:$4 sm:$0xff]  }
   0x3   :  { %184 = vmatpush1.bf16.msra.mxu0 %v1540_v3  ;;  %v1572_v8 = vld [vmem:[%s2072_s1 + $0x4c] ss:$12 sps:$4 sm:$0xff]   ;;  %v1577_v9 = vld [vmem:[%s2072_s1 + $0x8] ss:$12 sps:$4 sm:$0xff]   ;;  %v1590_v11 = vld [vmem:[%s2072_s1 + $0x64] ss:$12 sps:$4 sm:$0xff]  }
   0x4   :  { %185 = vmatprep.subr.bf16.mxu0 %v1548_v4  ;;  %v1583_v10 = vld [vmem:[%s2072_s1 + $0x48] ss:$12 sps:$4 sm:$0xff]   ;;  %1222 = vmatpush3.bf16.msra.mxu1 %v1577_v9  ;;  %v1596_v12 = vld [vmem:[%s2072_s1 + $0x20] ss:$12 sps:$4 sm:$0xff]   ;;  %v1608_v14 = vld [vmem:[%s2072_s1 + $0x38] ss:$12 sps:$4 sm:$0xff]  }
   0x5   :  { %1223 = vmatprep.subr.bf16.mxu1 %v1506_v1  ;;  %v1601_v13 = vld [vmem:[%s2072_s1 + $0x60] ss:$12 sps:$4 sm:$0xff]   ;;  %v1614_v15 = vld [vmem:[%s2072_s1 + $0x7c] ss:$12 sps:$4 sm:$0xff]   ;;  %v1621_v16 = vld [vmem:[%s2072_s1 + $0x78] ss:$12 sps:$4 sm:$0xff]  }
   0x6   :  { %v1627_v17 = vld [vmem:[%s2072_s1 + $0x50] ss:$12 sps:$4 sm:$0xff]   ;;  %v1633_v18 = vld [vmem:[%s2072_s1 + $0x94] ss:$12 sps:$4 sm:$0xff]   ;;  %v1652_v21 = vld [vmem:[%s2072_s1 + $0xac] ss:$12 sps:$4 sm:$0xff]  }
   0x7   :  { %186 = vmatpush1.bf16.msra.mxu0 %v1554_v5  ;;  %v1640_v19 = vld [vmem:[%s2072_s1 + $0x90] ss:$12 sps:$4 sm:$0xff]   ;;  %v1646_v20 = vld [vmem:[%s2072_s1 + $0x68] ss:$12 sps:$4 sm:$0xff]   ;;  %v1665_v23 = vld [vmem:[%s2072_s1 + $0x80] ss:$12 sps:$4 sm:$0xff]  }
   0x8   :  { %187 = vmatprep.subr.bf16.mxu0 %v1560_v6  ;;  %1224 = vmatpush3.bf16.msra.mxu1 %v1596_v12  ;;  %v1659_v22 = vld [vmem:[%s2072_s1 + $0xa8] ss:$12 sps:$4 sm:$0xff]   ;;  %v1674_v24 = vld [vmem:[%s2072_s1 + $0x98] ss:$12 sps:$4 sm:$0xff]   ;;  %v1682_v26 = vld [vmem:[%s2072_s1 + $0xb0] ss:$12 sps:$4 sm:$0xff]  }
   0x9   :  { %1225 = vmatprep.subr.bf16.mxu1 %v1506_v1  ;;  %v264_v27 = vld [vmem:[%s2073_s0] sm:$0xff]  ;;  %v265_v46 = vld [vmem:[%s2073_s0 + $0x8] sm:$0xf]  ;;  %v1114_v60 = vld [vmem:[%s2073_s0 + $0xc] sm:$0xff] }
   0xa   :  { %v266_v28 = vunpack.c.l.bf16 %v264_v27  ;;  %v267_v30 = vunpack.c.h.bf16 %v264_v27  ;;  %v1728_v45 = vld [vmem:[%s2074_s2] ss:$0 sm:$0xff]  ;;  %v268_v49 = vunpack.c.l.bf16 %v265_v46  ;;  %v383_v61 = vunpack.c.l.bf16 %v1114_v60 }
   0xb   :  { %188 = vmatpush1.bf16.msra.mxu0 %v1566_v7 }
   0xc   :  { %189 = vmatprep.subr.bf16.mxu0 %v1572_v8  ;;  %1226 = vmatpush3.bf16.msra.mxu1 %v1608_v14 }
   0xd   :  { %1227 = vmatprep.subr.bf16.mxu1 %v1506_v1 }
   0xf   :  { %190 = vmatpush1.bf16.msra.mxu0 %v1583_v10 }
  0x10   :  { %191 = vmatprep.subr.bf16.mxu0 %v1590_v11  ;;  %1228 = vmatpush3.bf16.msra.mxu1 %v1627_v17 }
  0x11   :  { %1229 = vmatprep.subr.bf16.mxu1 %v1506_v1 }
  0x13   :  { %192 = vmatpush1.bf16.msra.mxu0 %v1601_v13 }
  0x14   :  { %193 = vmatprep.subr.bf16.mxu0 %v1614_v15  ;;  %1230 = vmatpush3.bf16.msra.mxu1 %v1646_v20 }
  0x15   :  { %1231 = vmatprep.subr.bf16.mxu1 %v1506_v1 }
  0x17   :  { %194 = vmatpush1.bf16.msra.mxu0 %v1621_v16 }
  0x18   :  { %195 = vmatprep.subr.bf16.mxu0 %v1633_v18  ;;  %1232 = vmatpush3.bf16.msra.mxu1 %v1665_v23 }
  0x19   :  { %1233 = vmatprep.subr.bf16.mxu1 %v1506_v1 }
  0x1b   :  { %196 = vmatpush1.bf16.msra.mxu0 %v1640_v19 }
  0x1c   :  { %197 = vmatprep.subr.bf16.mxu0 %v1652_v21  ;;  %1234 = vmatpush3.bf16.msra.mxu1 %v1674_v24 }
  0x1d   :  { %1235 = vmatprep.subr.bf16.mxu1 %v1506_v1 }
  0x1f   :  { %198 = vmatpush1.bf16.msra.mxu0 %v1659_v22 }
  0x20   :  { %299 = vmatprep.subr.bf16.mxu0 %v1533_v0  ;;  %1236 = vmatpush3.bf16.msra.mxu1 %v1682_v26 }
  0x21   :  { %1241 = vmatprep.subr.bf16.mxu1 %v1506_v1 }
  0x22   :  { %216 = vmatmul.mubr.bf16.vlgmr.msra.gmra.mrb[0].mxu0 %v1509_v25 }
  0x23   :  { %300 = vmatpush1.bf16.msra.mxu0 %v1540_v3  ;;  %331 = vmatprep.mubr.bf16.mxu0 %v1507_v2 }
  0x24   :  { %301 = vmatprep.subr.bf16.mxu0 %v1548_v4  ;;  %1238 = vmatmul.mubr.bf16.vlgmr.msra.gmra.mrb[0].mxu1 %v1509_v25  ;;  %v384_v25 = vunpack.c.h.bf16 %v1114_v60 }
  0x25   :  { %1242 = vmatpush3.bf16.msra.mxu1 %v1577_v9  ;;  %1257 = vmatprep.mubr.msk.bf16.mxu1 %vm1508_vm0, %v1506_v1 }
  0x26   :  { %1243 = vmatprep.subr.bf16.mxu1 %v1506_v1 }
  0x27   :  { %302 = vmatpush1.bf16.msra.mxu0 %v1554_v5 }
  0x28   :  { %303 = vmatprep.subr.bf16.mxu0 %v1560_v6 }
  0x29   :  { %1244 = vmatpush3.bf16.msra.mxu1 %v1596_v12 }
  0x2a   :  { %1245 = vmatprep.subr.bf16.mxu1 %v1506_v1 }
  0x2b   :  { %304 = vmatpush1.bf16.msra.mxu0 %v1566_v7 }
  0x2c   :  { %305 = vmatprep.subr.bf16.mxu0 %v1572_v8 }
  0x2d   :  { %1246 = vmatpush3.bf16.msra.mxu1 %v1608_v14 }
  0x2e   :  { %1247 = vmatprep.subr.bf16.mxu1 %v1506_v1 }
  0x2f   :  { %306 = vmatpush1.bf16.msra.mxu0 %v1583_v10 }
  0x30   :  { %307 = vmatprep.subr.bf16.mxu0 %v1590_v11 }
  0x31   :  { %1248 = vmatpush3.bf16.msra.mxu1 %v1627_v17 }
  0x32   :  { %1249 = vmatprep.subr.bf16.mxu1 %v1506_v1 }
  0x33   :  { %308 = vmatpush1.bf16.msra.mxu0 %v1601_v13 }
  0x34   :  { %309 = vmatprep.subr.bf16.mxu0 %v1614_v15 }
  0x35   :  { %1250 = vmatpush3.bf16.msra.mxu1 %v1646_v20 }
  0x36   :  { %1251 = vmatprep.subr.bf16.mxu1 %v1506_v1 }
  0x37   :  { %310 = vmatpush1.bf16.msra.mxu0 %v1621_v16 }
  0x38   :  { %311 = vmatprep.subr.bf16.mxu0 %v1633_v18 }
  0x39   :  { %1252 = vmatpush3.bf16.msra.mxu1 %v1665_v23 }
  0x3a   :  { %1253 = vmatprep.subr.bf16.mxu1 %v1506_v1 }
  0x3b   :  { %312 = vmatpush1.bf16.msra.mxu0 %v1640_v19 }
  0x3c   :  { %313 = vmatprep.subr.bf16.mxu0 %v1652_v21 }
  0x3d   :  { %1254 = vmatpush3.bf16.msra.mxu1 %v1674_v24 }
  0x3e   :  { %1255 = vmatprep.subr.bf16.mxu1 %v1506_v1 }
  0x3f   :  { %314 = vmatpush1.bf16.msra.mxu0 %v1659_v22 }
  0x40   :  { %411 = vmatprep.subr.bf16.mxu0 %v1533_v0 }
  0x41   :  { %1256 = vmatpush3.bf16.msra.mxu1 %v1682_v26 }
  0x42   :  { %1261 = vmatprep.subr.bf16.mxu1 %v1506_v1 }
  0xf5   :  { %v217_v29 = vpop.f32.mrb[0].mxu0 }
  0xf6   :  { %v269_v31 = vadd.f32 %v266_v28, %v217_v29  ;;  %v219_v32 = vpop.f32.mrb[1].mxu0 }
  0xf7   :  { %v221_v33 = vpop.f32.mrb[2].mxu0  ;;  %v276_v36 = vadd.f32 %v267_v30, %v219_v32  ;;  %v258_v38 = vpop.f32.mrb[0].mxu1 }
  0xf8   :  { %v1111_v34 = vmul.f32 -1.442695, %v269_v31  ;;  %v222_v35 = vpop.f32.mrb[3].mxu0  ;;  %v1239_v39 = vpop.f32.mrb[1].mxu1  ;;  %v289_v48 = vadd.f32 %v1728_v45, %v258_v38 }
  0xf9   :  { %v1112_v37 = vmul.f32 -1.442695, %v276_v36  ;;  %v261_v40 = vpop.f32.mrb[2].mxu1 }
  0xfa   :  { %1417 = vpow2.f32 %v1111_v34  ;;  %v1240_v41 = vpop.f32.mrb[3].mxu1  ;;  %v1783_v40 = vld [vmem:[%s2073_s0 + $0x14] ss:$12 sps:$4 sm:$0xff]  }
  0xfb   :  { %1419 = vpow2.f32 %v1112_v37 }
 0x104   :  { %v1418_v42 = vpop.eup %1417 }
 0x105   :  { %v273_v43 = vadd.f32 1.0, %v1418_v42  ;;  %v1420_v44 = vpop.eup %1419  ;;  %v385_v42 = vunpack.c.l.bf16 %v1783_v40 }
 0x106   :  { %v280_v47 = vadd.f32 1.0, %v1420_v44 }
 0x107   :  { %1421 = vrcp.f32 %v273_v43 }
 0x108   :  { %1423 = vrcp.f32 %v280_v47 }
 0x111   :  { %v1422_v50 = vpop.eup %1421 }
 0x112   :  { %v290_v51 = vmul.f32 %v1422_v50, %v289_v48  ;;  %v1424_v53 = vpop.eup %1423 }
 0x113   :  { %v293_v54 = vsub.f32 1.0, %v1424_v53  ;;  %v295_v57 = vmul.f32 0.0, %v1424_v53 }
 0x114   :  { %v291_v52 = vadd.f32 %v290_v51, %v268_v49 }
 0x116   :  { %1425 = vtanh.f32 %v291_v52 }
 0x120   :  { %v1426_v55 = vpop.eup %1425 }
 0x121   :  { %v294_v56 = vmul.f32 %v1426_v55, %v293_v54  ;;  %v1119_v55 = vld [vmem:[%s2073_s0 + $0x18] sm:$0xff] }
 0x123   :  { %v1734_v58 = vadd.f32 %v295_v57, %v294_v56  ;;  %v495_v56 = vunpack.c.l.bf16 %v1119_v55 }
 0x125   :  { %297 = vst [vmem:[%s2075_s3] sm:$0xff] %v1734_v58  ;;  %v298_v59 = vpack.c.bf16 %v1734_v58, %v1734_v58 }
 0x127   :  { %332 = vmatmul.mubr.bf16.vlgmr.msra.gmra.mrb[4].mxu0 %v298_v59  ;;  %1258 = vmatmul.mubr.bf16.vlgmr.msra.gmra.mrb[4].mxu1 %v298_v59  ;;  %v496_v59 = vunpack.c.h.bf16 %v1119_v55 }
 0x128   :  { %412 = vmatpush1.bf16.msra.mxu0 %v1540_v3  ;;  %1262 = vmatpush3.bf16.msra.mxu1 %v1577_v9 }
 0x129   :  { %413 = vmatprep.subr.bf16.mxu0 %v1548_v4  ;;  %1263 = vmatprep.subr.bf16.mxu1 %v1506_v1 }
 0x12a   :  { %443 = vmatprep.mubr.bf16.mxu0 %v1507_v2  ;;  %1277 = vmatprep.mubr.msk.bf16.mxu1 %vm1508_vm0, %v1506_v1 }
 0x12c   :  { %414 = vmatpush1.bf16.msra.mxu0 %v1554_v5  ;;  %1264 = vmatpush3.bf16.msra.mxu1 %v1596_v12 }
 0x12d   :  { %415 = vmatprep.subr.bf16.mxu0 %v1560_v6  ;;  %1265 = vmatprep.subr.bf16.mxu1 %v1506_v1 }
 0x130   :  { %416 = vmatpush1.bf16.msra.mxu0 %v1566_v7  ;;  %1266 = vmatpush3.bf16.msra.mxu1 %v1608_v14 }
 0x131   :  { %417 = vmatprep.subr.bf16.mxu0 %v1572_v8  ;;  %1267 = vmatprep.subr.bf16.mxu1 %v1506_v1 }
 0x134   :  { %418 = vmatpush1.bf16.msra.mxu0 %v1583_v10  ;;  %1268 = vmatpush3.bf16.msra.mxu1 %v1627_v17 }
 0x135   :  { %419 = vmatprep.subr.bf16.mxu0 %v1590_v11  ;;  %1269 = vmatprep.subr.bf16.mxu1 %v1506_v1 }
 0x138   :  { %420 = vmatpush1.bf16.msra.mxu0 %v1601_v13  ;;  %1270 = vmatpush3.bf16.msra.mxu1 %v1646_v20 }
 0x139   :  { %421 = vmatprep.subr.bf16.mxu0 %v1614_v15  ;;  %1271 = vmatprep.subr.bf16.mxu1 %v1506_v1 }
 0x13c   :  { %422 = vmatpush1.bf16.msra.mxu0 %v1621_v16  ;;  %1272 = vmatpush3.bf16.msra.mxu1 %v1665_v23 }
 0x13d   :  { %423 = vmatprep.subr.bf16.mxu0 %v1633_v18  ;;  %1273 = vmatprep.subr.bf16.mxu1 %v1506_v1 }
 0x140   :  { %424 = vmatpush1.bf16.msra.mxu0 %v1640_v19  ;;  %1274 = vmatpush3.bf16.msra.mxu1 %v1674_v24 }
 0x141   :  { %425 = vmatprep.subr.bf16.mxu0 %v1652_v21  ;;  %1275 = vmatprep.subr.bf16.mxu1 %v1506_v1 }
 0x144   :  { %426 = vmatpush1.bf16.msra.mxu0 %v1659_v22  ;;  %1276 = vmatpush3.bf16.msra.mxu1 %v1682_v26 }
 0x145   :  { %523 = vmatprep.subr.bf16.mxu0 %v1533_v0  ;;  %1281 = vmatprep.subr.bf16.mxu1 %v1506_v1 }
 0x1fa   :  { %v333_v62 = vpop.f32.mrb[4].mxu0  ;;  %v374_v63 = vpop.f32.mrb[4].mxu1 }
 0x1fb   :  { %v386_v27 = vadd.f32 %v383_v61, %v333_v62  ;;  %v335_v28 = vpop.f32.mrb[5].mxu0  ;;  %v1259_v29 = vpop.f32.mrb[5].mxu1  ;;  %v400_v43 = vadd.f32 %v1728_v45, %v374_v63 }
 0x1fc   :  { %v337_v30 = vpop.f32.mrb[6].mxu0  ;;  %v377_v31 = vpop.f32.mrb[6].mxu1  ;;  %v393_v35 = vadd.f32 %v384_v25, %v335_v28 }
 0x1fd   :  { %v1116_v32 = vmul.f32 -1.442695, %v386_v27  ;;  %v338_v33 = vpop.f32.mrb[7].mxu0  ;;  %v1260_v34 = vpop.f32.mrb[7].mxu1 }
 0x1fe   :  { %v1117_v36 = vmul.f32 -1.442695, %v393_v35 }
 0x1ff   :  { %1427 = vpow2.f32 %v1116_v32 }
 0x200   :  { %1429 = vpow2.f32 %v1117_v36  ;;  %v497_v36 = vunpack.c.h.bf16 %v1783_v40 }
 0x209   :  { %v1428_v37 = vpop.eup %1427 }
 0x20a   :  { %v390_v38 = vadd.f32 1.0, %v1428_v37  ;;  %v1430_v39 = vpop.eup %1429 }
 0x20b   :  { %v397_v41 = vadd.f32 1.0, %v1430_v39 }
 0x20c   :  { %1431 = vrcp.f32 %v390_v38 }
 0x20d   :  { %1433 = vrcp.f32 %v397_v41 }
 0x216   :  { %v1432_v44 = vpop.eup %1431 }
 0x217   :  { %v401_v46 = vmul.f32 %v1432_v44, %v400_v43  ;;  %v1434_v48 = vpop.eup %1433 }
 0x218   :  { %v404_v49 = vsub.f32 1.0, %v1434_v48  ;;  %v406_v52 = vmul.f32 %v1434_v48, %v1734_v58 }
 0x219   :  { %v402_v47 = vadd.f32 %v401_v46, %v385_v42 }
 0x21b   :  { %1435 = vtanh.f32 %v402_v47 }
 0x225   :  { %v1436_v50 = vpop.eup %1435 }
 0x226   :  { %v405_v51 = vmul.f32 %v1436_v50, %v404_v49  ;;  %v1124_v49 = vld [vmem:[%s2073_s0 + $0x24] sm:$0xff] }
 0x227   :  { %v607_v50 = vunpack.c.l.bf16 %v1124_v49 }
 0x228   :  { %v1788_v53 = vadd.f32 %v406_v52, %v405_v51 }
 0x22a   :  { %1118 = vst [vmem:[%s2075_s3 + $0x8] sm:$0xff] %v1788_v53  ;;  %v410_v54 = vpack.c.bf16 %v1788_v53, %v1788_v53 }
 0x22c   :  { %444 = vmatmul.mubr.bf16.vlgmr.msra.gmra.mrb[8].mxu0 %v410_v54  ;;  %1278 = vmatmul.mubr.bf16.vlgmr.msra.gmra.mrb[8].mxu1 %v410_v54 }
 0x22d   :  { %524 = vmatpush1.bf16.msra.mxu0 %v1540_v3  ;;  %1282 = vmatpush3.bf16.msra.mxu1 %v1577_v9 }
 0x22e   :  { %525 = vmatprep.subr.bf16.mxu0 %v1548_v4  ;;  %1283 = vmatprep.subr.bf16.mxu1 %v1506_v1 }
 0x22f   :  { %555 = vmatprep.mubr.bf16.mxu0 %v1507_v2  ;;  %1297 = vmatprep.mubr.msk.bf16.mxu1 %vm1508_vm0, %v1506_v1 }
 0x231   :  { %526 = vmatpush1.bf16.msra.mxu0 %v1554_v5  ;;  %1284 = vmatpush3.bf16.msra.mxu1 %v1596_v12 }
 0x232   :  { %527 = vmatprep.subr.bf16.mxu0 %v1560_v6  ;;  %1285 = vmatprep.subr.bf16.mxu1 %v1506_v1 }
 0x235   :  { %528 = vmatpush1.bf16.msra.mxu0 %v1566_v7  ;;  %1286 = vmatpush3.bf16.msra.mxu1 %v1608_v14 }
 0x236   :  { %529 = vmatprep.subr.bf16.mxu0 %v1572_v8  ;;  %1287 = vmatprep.subr.bf16.mxu1 %v1506_v1 }
 0x239   :  { %530 = vmatpush1.bf16.msra.mxu0 %v1583_v10  ;;  %1288 = vmatpush3.bf16.msra.mxu1 %v1627_v17 }
 0x23a   :  { %531 = vmatprep.subr.bf16.mxu0 %v1590_v11  ;;  %1289 = vmatprep.subr.bf16.mxu1 %v1506_v1 }
 0x23d   :  { %532 = vmatpush1.bf16.msra.mxu0 %v1601_v13  ;;  %1290 = vmatpush3.bf16.msra.mxu1 %v1646_v20 }
 0x23e   :  { %533 = vmatprep.subr.bf16.mxu0 %v1614_v15  ;;  %1291 = vmatprep.subr.bf16.mxu1 %v1506_v1 }
 0x241   :  { %534 = vmatpush1.bf16.msra.mxu0 %v1621_v16  ;;  %1292 = vmatpush3.bf16.msra.mxu1 %v1665_v23 }
 0x242   :  { %535 = vmatprep.subr.bf16.mxu0 %v1633_v18  ;;  %1293 = vmatprep.subr.bf16.mxu1 %v1506_v1 }
 0x245   :  { %536 = vmatpush1.bf16.msra.mxu0 %v1640_v19  ;;  %1294 = vmatpush3.bf16.msra.mxu1 %v1674_v24 }
 0x246   :  { %537 = vmatprep.subr.bf16.mxu0 %v1652_v21  ;;  %1295 = vmatprep.subr.bf16.mxu1 %v1506_v1 }
 0x249   :  { %538 = vmatpush1.bf16.msra.mxu0 %v1659_v22  ;;  %1296 = vmatpush3.bf16.msra.mxu1 %v1682_v26 }
 0x24a   :  { %635 = vmatprep.subr.bf16.mxu0 %v1533_v0  ;;  %1301 = vmatprep.subr.bf16.mxu1 %v1506_v1 }
 0x2ff   :  { %v445_v57 = vpop.f32.mrb[8].mxu0  ;;  %v486_v58 = vpop.f32.mrb[8].mxu1 }
 0x300   :  { %v498_v60 = vadd.f32 %v495_v56, %v445_v57  ;;  %v447_v61 = vpop.f32.mrb[9].mxu0  ;;  %v1279_v62 = vpop.f32.mrb[9].mxu1  ;;  %v512_v37 = vadd.f32 %v1728_v45, %v486_v58 }
 0x301   :  { %v449_v63 = vpop.f32.mrb[10].mxu0  ;;  %v489_v25 = vpop.f32.mrb[10].mxu1  ;;  %v505_v30 = vadd.f32 %v496_v59, %v447_v61 }
 0x302   :  { %v1121_v27 = vmul.f32 -1.442695, %v498_v60  ;;  %v450_v28 = vpop.f32.mrb[11].mxu0  ;;  %v1280_v29 = vpop.f32.mrb[11].mxu1 }
 0x303   :  { %v1122_v31 = vmul.f32 -1.442695, %v505_v30  ;;  %v1886_v29 = vld [vmem:[%s2073_s0 + $0x2c] ss:$12 sps:$4 sm:$0xff]  }
 0x304   :  { %1437 = vpow2.f32 %v1121_v27 }
 0x305   :  { %1439 = vpow2.f32 %v1122_v31  ;;  %v609_v31 = vunpack.c.l.bf16 %v1886_v29 }
 0x30e   :  { %v1438_v32 = vpop.eup %1437 }
 0x30f   :  { %v502_v33 = vadd.f32 1.0, %v1438_v32  ;;  %v1440_v34 = vpop.eup %1439 }
 0x310   :  { %v509_v35 = vadd.f32 1.0, %v1440_v34 }
 0x311   :  { %1441 = vrcp.f32 %v502_v33 }
 0x312   :  { %1443 = vrcp.f32 %v509_v35 }
 0x31b   :  { %v1442_v38 = vpop.eup %1441 }
 0x31c   :  { %v513_v39 = vmul.f32 %v1442_v38, %v512_v37  ;;  %v1444_v42 = vpop.eup %1443 }
 0x31d   :  { %v516_v43 = vsub.f32 1.0, %v1444_v42  ;;  %v518_v47 = vmul.f32 %v1444_v42, %v1788_v53  ;;  %v608_v53 = vunpack.c.h.bf16 %v1124_v49 }
 0x31e   :  { %v514_v41 = vadd.f32 %v513_v39, %v497_v36 }
 0x320   :  { %1445 = vtanh.f32 %v514_v41 }
 0x32a   :  { %v1446_v44 = vpop.eup %1445 }
 0x32b   :  { %v517_v46 = vmul.f32 %v1446_v44, %v516_v43  ;;  %v1129_v44 = vld [vmem:[%s2073_s0 + $0x30] sm:$0xff] }
 0x32d   :  { %v1837_v48 = vadd.f32 %v518_v47, %v517_v46  ;;  %v719_v46 = vunpack.c.l.bf16 %v1129_v44 }
 0x32f   :  { %1123 = vst [vmem:[%s2075_s3 + $0x10] sm:$0xff] %v1837_v48  ;;  %v522_v40 = vpack.c.bf16 %v1837_v48, %v1837_v48 }
 0x331   :  { %556 = vmatmul.mubr.bf16.vlgmr.msra.gmra.mrb[12].mxu0 %v522_v40  ;;  %1298 = vmatmul.mubr.bf16.vlgmr.msra.gmra.mrb[12].mxu1 %v522_v40  ;;  %v720_v40 = vunpack.c.h.bf16 %v1129_v44 }
 0x332   :  { %636 = vmatpush1.bf16.msra.mxu0 %v1540_v3  ;;  %1302 = vmatpush3.bf16.msra.mxu1 %v1577_v9 }
 0x333   :  { %637 = vmatprep.subr.bf16.mxu0 %v1548_v4  ;;  %1303 = vmatprep.subr.bf16.mxu1 %v1506_v1 }
 0x334   :  { %667 = vmatprep.mubr.bf16.mxu0 %v1507_v2  ;;  %1317 = vmatprep.mubr.msk.bf16.mxu1 %vm1508_vm0, %v1506_v1 }
 0x336   :  { %638 = vmatpush1.bf16.msra.mxu0 %v1554_v5  ;;  %1304 = vmatpush3.bf16.msra.mxu1 %v1596_v12 }
 0x337   :  { %639 = vmatprep.subr.bf16.mxu0 %v1560_v6  ;;  %1305 = vmatprep.subr.bf16.mxu1 %v1506_v1 }
 0x33a   :  { %640 = vmatpush1.bf16.msra.mxu0 %v1566_v7  ;;  %1306 = vmatpush3.bf16.msra.mxu1 %v1608_v14 }
 0x33b   :  { %641 = vmatprep.subr.bf16.mxu0 %v1572_v8  ;;  %1307 = vmatprep.subr.bf16.mxu1 %v1506_v1 }
 0x33e   :  { %642 = vmatpush1.bf16.msra.mxu0 %v1583_v10  ;;  %1308 = vmatpush3.bf16.msra.mxu1 %v1627_v17 }
 0x33f   :  { %643 = vmatprep.subr.bf16.mxu0 %v1590_v11  ;;  %1309 = vmatprep.subr.bf16.mxu1 %v1506_v1 }
 0x342   :  { %644 = vmatpush1.bf16.msra.mxu0 %v1601_v13  ;;  %1310 = vmatpush3.bf16.msra.mxu1 %v1646_v20 }
 0x343   :  { %645 = vmatprep.subr.bf16.mxu0 %v1614_v15  ;;  %1311 = vmatprep.subr.bf16.mxu1 %v1506_v1 }
 0x346   :  { %646 = vmatpush1.bf16.msra.mxu0 %v1621_v16  ;;  %1312 = vmatpush3.bf16.msra.mxu1 %v1665_v23 }
 0x347   :  { %647 = vmatprep.subr.bf16.mxu0 %v1633_v18  ;;  %1313 = vmatprep.subr.bf16.mxu1 %v1506_v1 }
 0x34a   :  { %648 = vmatpush1.bf16.msra.mxu0 %v1640_v19  ;;  %1314 = vmatpush3.bf16.msra.mxu1 %v1674_v24 }
 0x34b   :  { %649 = vmatprep.subr.bf16.mxu0 %v1652_v21  ;;  %1315 = vmatprep.subr.bf16.mxu1 %v1506_v1 }
 0x34e   :  { %650 = vmatpush1.bf16.msra.mxu0 %v1659_v22  ;;  %1316 = vmatpush3.bf16.msra.mxu1 %v1682_v26 }
 0x34f   :  { %747 = vmatprep.subr.bf16.mxu0 %v1533_v0  ;;  %1321 = vmatprep.subr.bf16.mxu1 %v1506_v1 }
 0x404   :  { %v557_v51 = vpop.f32.mrb[12].mxu0  ;;  %v598_v52 = vpop.f32.mrb[12].mxu1 }
 0x405   :  { %v610_v54 = vadd.f32 %v607_v50, %v557_v51  ;;  %v559_v55 = vpop.f32.mrb[13].mxu0  ;;  %v1299_v56 = vpop.f32.mrb[13].mxu1  ;;  %v624_v32 = vadd.f32 %v1728_v45, %v598_v52 }
 0x406   :  { %v561_v57 = vpop.f32.mrb[14].mxu0  ;;  %v601_v58 = vpop.f32.mrb[14].mxu1  ;;  %v617_v62 = vadd.f32 %v608_v53, %v559_v55 }
 0x407   :  { %v1126_v59 = vmul.f32 -1.442695, %v610_v54  ;;  %v562_v60 = vpop.f32.mrb[15].mxu0  ;;  %v1300_v61 = vpop.f32.mrb[15].mxu1 }
 0x408   :  { %v1127_v63 = vmul.f32 -1.442695, %v617_v62 }
 0x409   :  { %1447 = vpow2.f32 %v1126_v59 }
 0x40a   :  { %1449 = vpow2.f32 %v1127_v63  ;;  %v721_v63 = vunpack.c.h.bf16 %v1886_v29 }
 0x413   :  { %v1448_v25 = vpop.eup %1447 }
 0x414   :  { %v614_v27 = vadd.f32 1.0, %v1448_v25  ;;  %v1450_v28 = vpop.eup %1449 }
 0x415   :  { %v621_v30 = vadd.f32 1.0, %v1450_v28 }
 0x416   :  { %1451 = vrcp.f32 %v614_v27 }
 0x417   :  { %1453 = vrcp.f32 %v621_v30 }
 0x420   :  { %v1452_v33 = vpop.eup %1451 }
 0x421   :  { %v625_v34 = vmul.f32 %v1452_v33, %v624_v32  ;;  %v1454_v36 = vpop.eup %1453 }
 0x422   :  { %v628_v37 = vsub.f32 1.0, %v1454_v36  ;;  %v630_v41 = vmul.f32 %v1454_v36, %v1837_v48 }
 0x423   :  { %v626_v35 = vadd.f32 %v625_v34, %v609_v31 }
 0x425   :  { %1455 = vtanh.f32 %v626_v35 }
 0x42f   :  { %v1456_v38 = vpop.eup %1455 }
 0x430   :  { %v629_v39 = vmul.f32 %v1456_v38, %v628_v37 }
 0x432   :  { %v1891_v42 = vadd.f32 %v630_v41, %v629_v39 }
 0x434   :  { %1128 = vst [vmem:[%s2075_s3 + $0x18] sm:$0xff] %v1891_v42  ;;  %v634_v43 = vpack.c.bf16 %v1891_v42, %v1891_v42 }
 0x436   :  { %668 = vmatmul.mubr.bf16.vlgmr.msra.gmra.mrb[16].mxu0 %v634_v43  ;;  %1318 = vmatmul.mubr.bf16.vlgmr.msra.gmra.mrb[16].mxu1 %v634_v43 }
 0x437   :  { %748 = vmatpush1.bf16.msra.mxu0 %v1540_v3  ;;  %1322 = vmatpush3.bf16.msra.mxu1 %v1577_v9 }
 0x438   :  { %749 = vmatprep.subr.bf16.mxu0 %v1548_v4  ;;  %1323 = vmatprep.subr.bf16.mxu1 %v1506_v1 }
 0x439   :  { %779 = vmatprep.mubr.bf16.mxu0 %v1507_v2  ;;  %1337 = vmatprep.mubr.msk.bf16.mxu1 %vm1508_vm0, %v1506_v1 }
 0x43b   :  { %750 = vmatpush1.bf16.msra.mxu0 %v1554_v5  ;;  %1324 = vmatpush3.bf16.msra.mxu1 %v1596_v12 }
 0x43c   :  { %751 = vmatprep.subr.bf16.mxu0 %v1560_v6  ;;  %1325 = vmatprep.subr.bf16.mxu1 %v1506_v1 }
 0x43f   :  { %752 = vmatpush1.bf16.msra.mxu0 %v1566_v7  ;;  %1326 = vmatpush3.bf16.msra.mxu1 %v1608_v14 }
 0x440   :  { %753 = vmatprep.subr.bf16.mxu0 %v1572_v8  ;;  %1327 = vmatprep.subr.bf16.mxu1 %v1506_v1 }
 0x443   :  { %754 = vmatpush1.bf16.msra.mxu0 %v1583_v10  ;;  %1328 = vmatpush3.bf16.msra.mxu1 %v1627_v17 }
 0x444   :  { %755 = vmatprep.subr.bf16.mxu0 %v1590_v11  ;;  %1329 = vmatprep.subr.bf16.mxu1 %v1506_v1 }
 0x447   :  { %756 = vmatpush1.bf16.msra.mxu0 %v1601_v13  ;;  %1330 = vmatpush3.bf16.msra.mxu1 %v1646_v20 }
 0x448   :  { %757 = vmatprep.subr.bf16.mxu0 %v1614_v15  ;;  %1331 = vmatprep.subr.bf16.mxu1 %v1506_v1 }
 0x44b   :  { %758 = vmatpush1.bf16.msra.mxu0 %v1621_v16  ;;  %1332 = vmatpush3.bf16.msra.mxu1 %v1665_v23 }
 0x44c   :  { %759 = vmatprep.subr.bf16.mxu0 %v1633_v18  ;;  %1333 = vmatprep.subr.bf16.mxu1 %v1506_v1 }
 0x44f   :  { %760 = vmatpush1.bf16.msra.mxu0 %v1640_v19  ;;  %1334 = vmatpush3.bf16.msra.mxu1 %v1674_v24 }
 0x450   :  { %761 = vmatprep.subr.bf16.mxu0 %v1652_v21  ;;  %1335 = vmatprep.subr.bf16.mxu1 %v1506_v1 }
 0x453   :  { %762 = vmatpush1.bf16.msra.mxu0 %v1659_v22  ;;  %1336 = vmatpush3.bf16.msra.mxu1 %v1682_v26 }
 0x454   :  { %859 = vmatprep.subr.bf16.mxu0 %v1533_v0  ;;  %1341 = vmatprep.subr.bf16.mxu1 %v1506_v1 }
 0x509   :  { %v669_v47 = vpop.f32.mrb[16].mxu0  ;;  %v710_v48 = vpop.f32.mrb[16].mxu1 }
 0x50a   :  { %v722_v49 = vadd.f32 %v719_v46, %v669_v47  ;;  %v671_v50 = vpop.f32.mrb[17].mxu0  ;;  %v1319_v51 = vpop.f32.mrb[17].mxu1  ;;  %v736_v25 = vadd.f32 %v1728_v45, %v710_v48  ;;  %v1989_v47 = vld [vmem:[%s2073_s0 + $0x44] ss:$12 sps:$4 sm:$0xff]  }
 0x50b   :  { %v673_v52 = vpop.f32.mrb[18].mxu0  ;;  %v713_v53 = vpop.f32.mrb[18].mxu1  ;;  %v729_v57 = vadd.f32 %v720_v40, %v671_v50  ;;  %v833_v40 = vunpack.c.l.bf16 %v1989_v47 }
 0x50c   :  { %v1131_v54 = vmul.f32 -1.442695, %v722_v49  ;;  %v674_v55 = vpop.f32.mrb[19].mxu0  ;;  %v1320_v56 = vpop.f32.mrb[19].mxu1 }
 0x50d   :  { %v1132_v58 = vmul.f32 -1.442695, %v729_v57 }
 0x50e   :  { %1457 = vpow2.f32 %v1131_v54 }
 0x50f   :  { %1459 = vpow2.f32 %v1132_v58 }
 0x518   :  { %v1458_v59 = vpop.eup %1457 }
 0x519   :  { %v726_v60 = vadd.f32 1.0, %v1458_v59  ;;  %v1460_v61 = vpop.eup %1459 }
 0x51a   :  { %v733_v62 = vadd.f32 1.0, %v1460_v61  ;;  %v1498_v61 = vld [vmem:[%s2072_s1 + $0x1c] ss:$12 sps:$4 sm:$0xff]  }
 0x51b   :  { %1461 = vrcp.f32 %v726_v60  ;;  %v1497_v60 = vld [vmem:[%s2072_s1] ss:$12 sps:$4 sm:$0xff]  }
 0x51c   :  { %1463 = vrcp.f32 %v733_v62  ;;  %v1499_v62 = vld [vmem:[%s2072_s1 + $0x18] ss:$12 sps:$4 sm:$0xff]  }
 0x525   :  { %v1462_v27 = vpop.eup %1461 }
 0x526   :  { %v737_v28 = vmul.f32 %v1462_v27, %v736_v25  ;;  %v1464_v31 = vpop.eup %1463  ;;  %v1504_v25 = vld [vmem:[%s2072_s1 + $0x64] ss:$12 sps:$4 sm:$0xff]  }
 0x527   :  { %v740_v32 = vsub.f32 1.0, %v1464_v31  ;;  %v742_v35 = vmul.f32 %v1464_v31, %v1891_v42 }
 0x528   :  { %v738_v30 = vadd.f32 %v737_v28, %v721_v63  ;;  %v1502_v63 = vld [vmem:[%s2072_s1 + $0x4c] ss:$12 sps:$4 sm:$0xff]  }
 0x52a   :  { %1465 = vtanh.f32 %v738_v30 }
 0x534   :  { %v1466_v33 = vpop.eup %1465 }
 0x535   :  { %v741_v34 = vmul.f32 %v1466_v33, %v740_v32 }
 0x537   :  { %v1940_v36 = vadd.f32 %v742_v35, %v741_v34  ;;  %v945_v35 = vunpack.c.h.bf16 %v1989_v47 }
 0x539   :  { %1133 = vst [vmem:[%s2075_s3 + $0x20] sm:$0xff] %v1940_v36  ;;  %v746_v29 = vpack.c.bf16 %v1940_v36, %v1940_v36 }
 0x53b   :  { %780 = vmatmul.mubr.bf16.vlgmr.msra.gmra.mrb[20].mxu0 %v746_v29  ;;  %1338 = vmatmul.mubr.bf16.vlgmr.msra.gmra.mrb[20].mxu1 %v746_v29 }
 0x53c   :  { %860 = vmatpush1.bf16.msra.mxu0 %v1540_v3  ;;  %1342 = vmatpush3.bf16.msra.mxu1 %v1577_v9  ;;  %v1134_v3 = vld [vmem:[%s2073_s0 + $0x3c] sm:$0xff] }
 0x53d   :  { %861 = vmatprep.subr.bf16.mxu0 %v1548_v4  ;;  %1343 = vmatprep.subr.bf16.mxu1 %v1506_v1  ;;  %v831_v4 = vunpack.c.l.bf16 %v1134_v3 }
 0x53e   :  { %891 = vmatprep.mubr.bf16.mxu0 %v1507_v2  ;;  %1357 = vmatprep.mubr.msk.bf16.mxu1 %vm1508_vm0, %v1506_v1 }
 0x540   :  { %862 = vmatpush1.bf16.msra.mxu0 %v1554_v5  ;;  %1344 = vmatpush3.bf16.msra.mxu1 %v1596_v12 }
 0x541   :  { %863 = vmatprep.subr.bf16.mxu0 %v1560_v6  ;;  %1345 = vmatprep.subr.bf16.mxu1 %v1506_v1 }
 0x544   :  { %864 = vmatpush1.bf16.msra.mxu0 %v1566_v7  ;;  %1346 = vmatpush3.bf16.msra.mxu1 %v1608_v14  ;;  %v832_v7 = vunpack.c.h.bf16 %v1134_v3 }
 0x545   :  { %865 = vmatprep.subr.bf16.mxu0 %v1572_v8  ;;  %1347 = vmatprep.subr.bf16.mxu1 %v1506_v1 }
 0x548   :  { %866 = vmatpush1.bf16.msra.mxu0 %v1583_v10  ;;  %1348 = vmatpush3.bf16.msra.mxu1 %v1627_v17 }
 0x549   :  { %867 = vmatprep.subr.bf16.mxu0 %v1590_v11  ;;  %1349 = vmatprep.subr.bf16.mxu1 %v1506_v1 }
 0x54c   :  { %868 = vmatpush1.bf16.msra.mxu0 %v1601_v13  ;;  %1350 = vmatpush3.bf16.msra.mxu1 %v1646_v20 }
 0x54d   :  { %869 = vmatprep.subr.bf16.mxu0 %v1614_v15  ;;  %1351 = vmatprep.subr.bf16.mxu1 %v1506_v1 }
 0x550   :  { %870 = vmatpush1.bf16.msra.mxu0 %v1621_v16  ;;  %1352 = vmatpush3.bf16.msra.mxu1 %v1665_v23 }
 0x551   :  { %871 = vmatprep.subr.bf16.mxu0 %v1633_v18  ;;  %1353 = vmatprep.subr.bf16.mxu1 %v1506_v1 }
 0x554   :  { %872 = vmatpush1.bf16.msra.mxu0 %v1640_v19  ;;  %1354 = vmatpush3.bf16.msra.mxu1 %v1674_v24 }
 0x555   :  { %873 = vmatprep.subr.bf16.mxu0 %v1652_v21  ;;  %1355 = vmatprep.subr.bf16.mxu1 %v1506_v1 }
 0x558   :  { %874 = vmatpush1.bf16.msra.mxu0 %v1659_v22  ;;  %1356 = vmatpush3.bf16.msra.mxu1 %v1682_v26 }
 0x559   :  { %971 = vmatprep.subr.bf16.mxu0 %v1533_v0  ;;  %1361 = vmatprep.subr.bf16.mxu1 %v1506_v1 }
 0x60e   :  { %v781_v5 = vpop.f32.mrb[20].mxu0  ;;  %v822_v6 = vpop.f32.mrb[20].mxu1 }
 0x60f   :  { %v834_v8 = vadd.f32 %v831_v4, %v781_v5  ;;  %v783_v10 = vpop.f32.mrb[21].mxu0  ;;  %v1339_v11 = vpop.f32.mrb[21].mxu1  ;;  %v848_v49 = vadd.f32 %v1728_v45, %v822_v6 }
 0x610   :  { %v785_v13 = vpop.f32.mrb[22].mxu0  ;;  %v825_v37 = vpop.f32.mrb[22].mxu1  ;;  %v841_v42 = vadd.f32 %v832_v7, %v783_v10 }
 0x611   :  { %v1136_v38 = vmul.f32 -1.442695, %v834_v8  ;;  %v786_v39 = vpop.f32.mrb[23].mxu0  ;;  %v1340_v41 = vpop.f32.mrb[23].mxu1  ;;  %v1144_v37 = vld [vmem:[%s2073_s0 + $0x54] sm:$0xff] }
 0x612   :  { %v1137_v0 = vmul.f32 -1.442695, %v841_v42  ;;  %v1056_v42 = vunpack.c.h.bf16 %v1144_v37 }
 0x613   :  { %1467 = vpow2.f32 %v1136_v38  ;;  %v1055_v38 = vunpack.c.l.bf16 %v1144_v37 }
 0x614   :  { %1469 = vpow2.f32 %v1137_v0 }
 0x61d   :  { %v1468_v43 = vpop.eup %1467 }
 0x61e   :  { %v838_v44 = vadd.f32 1.0, %v1468_v43  ;;  %v1470_v46 = vpop.eup %1469 }
 0x61f   :  { %v845_v48 = vadd.f32 1.0, %v1470_v46 }
 0x620   :  { %1471 = vrcp.f32 %v838_v44 }
 0x621   :  { %1473 = vrcp.f32 %v845_v48 }
 0x62a   :  { %v1472_v50 = vpop.eup %1471 }
 0x62b   :  { %v849_v51 = vmul.f32 %v1472_v50, %v848_v49  ;;  %v1474_v53 = vpop.eup %1473 }
 0x62c   :  { %v852_v54 = vsub.f32 1.0, %v1474_v53  ;;  %v854_v57 = vmul.f32 %v1474_v53, %v1940_v36 }
 0x62d   :  { %v850_v52 = vadd.f32 %v849_v51, %v833_v40 }
 0x62f   :  { %1475 = vtanh.f32 %v850_v52 }
 0x639   :  { %v1476_v55 = vpop.eup %1475 }
 0x63a   :  { %v853_v56 = vmul.f32 %v1476_v55, %v852_v54  ;;  %v1145_v55 = vld [vmem:[%s2073_s0 + $0x5c] sm:$0xf] }
 0x63c   :  { %v1994_v58 = vadd.f32 %v854_v57, %v853_v56  ;;  %v1057_v57 = vunpack.c.l.bf16 %v1145_v55 }
 0x63e   :  { %1138 = vst [vmem:[%s2075_s3 + $0x28] sm:$0xff] %v1994_v58  ;;  %v858_v59 = vpack.c.bf16 %v1994_v58, %v1994_v58 }
 0x640   :  { %892 = vmatmul.mubr.bf16.vlgmr.msra.gmra.mrb[24].mxu0 %v858_v59  ;;  %1358 = vmatmul.mubr.bf16.vlgmr.msra.gmra.mrb[24].mxu1 %v858_v59 }
 0x641   :  { %972 = vmatpush1.bf16.msra.mxu0 %v1497_v60  ;;  %1362 = vmatpush3.bf16.msra.mxu1 %v1577_v9  ;;  %v1500_v9 = vld [vmem:[%s2072_s1 + $0x34] ss:$12 sps:$4 sm:$0xff]  }
 0x642   :  { %973 = vmatprep.subr.bf16.mxu0 %v1498_v61  ;;  %1363 = vmatprep.subr.bf16.mxu1 %v1506_v1 }
 0x643   :  { %1003 = vmatprep.mubr.bf16.mxu0 %v1507_v2  ;;  %1377 = vmatprep.mubr.msk.bf16.mxu1 %vm1508_vm0, %v1506_v1  ;;  %v1501_v2 = vld [vmem:[%s2072_s1 + $0x30] ss:$12 sps:$4 sm:$0xff]  }
 0x645   :  { %974 = vmatpush1.bf16.msra.mxu0 %v1499_v62  ;;  %1364 = vmatpush3.bf16.msra.mxu1 %v1596_v12  ;;  %v1503_v12 = vld [vmem:[%s2072_s1 + $0x48] ss:$12 sps:$4 sm:$0xff]  }
 0x646   :  { %975 = vmatprep.subr.bf16.mxu0 %v1500_v9  ;;  %1365 = vmatprep.subr.bf16.mxu1 %v1506_v1 }
 0x649   :  { %976 = vmatpush1.bf16.msra.mxu0 %v1501_v2  ;;  %1366 = vmatpush3.bf16.msra.mxu1 %v1608_v14  ;;  %v1505_v14 = vld [vmem:[%s2072_s1 + $0x60] ss:$12 sps:$4 sm:$0xff]  }
 0x64a   :  { %977 = vmatprep.subr.bf16.mxu0 %v1502_v63  ;;  %1367 = vmatprep.subr.bf16.mxu1 %v1506_v1 }
 0x64d   :  { %978 = vmatpush1.bf16.msra.mxu0 %v1503_v12  ;;  %1368 = vmatpush3.bf16.msra.mxu1 %v1627_v17 }
 0x64e   :  { %979 = vmatprep.subr.bf16.mxu0 %v1504_v25  ;;  %1369 = vmatprep.subr.bf16.mxu1 %v1506_v1 }
 0x651   :  { %980 = vmatpush1.bf16.msra.mxu0 %v1505_v14  ;;  %1370 = vmatpush3.bf16.msra.mxu1 %v1646_v20 }
 0x652   :  { %981 = vmatprep.subr.bf16.mxu0 %v1614_v15  ;;  %1371 = vmatprep.subr.bf16.mxu1 %v1506_v1  ;;  %v1139_v15 = vld [vmem:[%s2073_s0 + $0x48] sm:$0xff] }
 0x653   :  { %v944_v20 = vunpack.c.h.bf16 %v1139_v15 }
 0x655   :  { %982 = vmatpush1.bf16.msra.mxu0 %v1621_v16  ;;  %1372 = vmatpush3.bf16.msra.mxu1 %v1665_v23  ;;  %v943_v16 = vunpack.c.l.bf16 %v1139_v15 }
 0x656   :  { %983 = vmatprep.subr.bf16.mxu0 %v1633_v18  ;;  %1373 = vmatprep.subr.bf16.mxu1 %v1506_v1 }
 0x659   :  { %984 = vmatpush1.bf16.msra.mxu0 %v1640_v19  ;;  %1374 = vmatpush3.bf16.msra.mxu1 %v1674_v24 }
 0x65a   :  { %985 = vmatprep.subr.bf16.mxu0 %v1652_v21  ;;  %1375 = vmatprep.subr.bf16.mxu1 %v1506_v1 }
 0x65d   :  { %986 = vmatpush1.bf16.msra.mxu0 %v1659_v22  ;;  %1376 = vmatpush3.bf16.msra.mxu1 %v1682_v26 }
 0x713   :  { %v893_v17 = vpop.f32.mrb[24].mxu0  ;;  %v934_v18 = vpop.f32.mrb[24].mxu1 }
 0x714   :  { %v946_v23 = vadd.f32 %v943_v16, %v893_v17  ;;  %v895_v19 = vpop.f32.mrb[25].mxu0  ;;  %v1359_v27 = vpop.f32.mrb[25].mxu1  ;;  %v960_v36 = vadd.f32 %v1728_v45, %v934_v18 }
 0x715   :  { %v897_v24 = vpop.f32.mrb[26].mxu0  ;;  %v937_v28 = vpop.f32.mrb[26].mxu1  ;;  %v953_v31 = vadd.f32 %v944_v20, %v895_v19 }
 0x716   :  { %v1141_v21 = vmul.f32 -1.442695, %v946_v23  ;;  %v898_v30 = vpop.f32.mrb[27].mxu0  ;;  %v1360_v1 = vpop.f32.mrb[27].mxu1 }
 0x717   :  { %v1142_v22 = vmul.f32 -1.442695, %v953_v31 }
 0x718   :  { %1477 = vpow2.f32 %v1141_v21 }
 0x719   :  { %1479 = vpow2.f32 %v1142_v22 }
 0x722   :  { %v1478_v26 = vpop.eup %1477 }
 0x723   :  { %v950_v32 = vadd.f32 1.0, %v1478_v26  ;;  %v1480_v33 = vpop.eup %1479 }
 0x724   :  { %v957_v34 = vadd.f32 1.0, %v1480_v33 }
 0x725   :  { %1481 = vrcp.f32 %v950_v32 }
 0x726   :  { %1483 = vrcp.f32 %v957_v34 }
 0x72f   :  { %v1482_v29 = vpop.eup %1481 }
 0x730   :  { %v961_v3 = vmul.f32 %v1482_v29, %v960_v36  ;;  %v1484_v5 = vpop.eup %1483 }
 0x731   :  { %v964_v6 = vsub.f32 1.0, %v1484_v5  ;;  %v966_v10 = vmul.f32 %v1484_v5, %v1994_v58 }
 0x732   :  { %v962_v4 = vadd.f32 %v961_v3, %v945_v35 }
 0x734   :  { %1485 = vtanh.f32 %v962_v4 }
 0x73e   :  { %v1486_v7 = vpop.eup %1485 }
 0x73f   :  { %v965_v8 = vmul.f32 %v1486_v7, %v964_v6 }
 0x741   :  { %v967_v11 = vadd.f32 %v966_v10, %v965_v8 }
 0x743   :  { %1143 = vst [vmem:[%s2075_s3 + $0x30] sm:$0xff] %v967_v11  ;;  %v970_v13 = vpack.c.bf16 %v967_v11, %v967_v11 }
 0x745   :  { %1004 = vmatmul.mubr.bf16.vlgmr.msra.gmra.mrb[28].mxu0 %v970_v13  ;;  %1378 = vmatmul.mubr.bf16.vlgmr.msra.gmra.mrb[28].mxu1 %v970_v13 }
 0x818   :  { %v1005_v39 = vpop.f32.mrb[28].mxu0  ;;  %v1046_v41 = vpop.f32.mrb[28].mxu1 }
 0x819   :  { %v1058_v0 = vadd.f32 %v1055_v38, %v1005_v39  ;;  %v1007_v43 = vpop.f32.mrb[29].mxu0  ;;  %v1379_v44 = vpop.f32.mrb[29].mxu1  ;;  %v1072_v58 = vadd.f32 %v1728_v45, %v1046_v41 }
 0x81a   :  { %v1009_v46 = vpop.f32.mrb[30].mxu0  ;;  %v1049_v47 = vpop.f32.mrb[30].mxu1  ;;  %v1065_v50 = vadd.f32 %v1056_v42, %v1007_v43 }
 0x81b   :  { %v1146_v48 = vmul.f32 -1.442695, %v1058_v0  ;;  %v1010_v40 = vpop.f32.mrb[31].mxu0  ;;  %v1380_v49 = vpop.f32.mrb[31].mxu1 }
 0x81c   :  { %v1147_v51 = vmul.f32 -1.442695, %v1065_v50 }
 0x81d   :  { %1487 = vpow2.f32 %v1146_v48 }
 0x81e   :  { %1489 = vpow2.f32 %v1147_v51 }
 0x827   :  { %v1488_v52 = vpop.eup %1487 }
 0x828   :  { %v1062_v53 = vadd.f32 1.0, %v1488_v52  ;;  %v1490_v54 = vpop.eup %1489 }
 0x829   :  { %v1069_v56 = vadd.f32 1.0, %v1490_v54 }
 0x82a   :  { %1491 = vrcp.f32 %v1062_v53 }
 0x82b   :  { %1493 = vrcp.f32 %v1069_v56 }
 0x834   :  { %v1492_v59 = vpop.eup %1491 }
 0x835   :  { %v1073_v60 = vmul.f32 %v1492_v59, %v1072_v58  ;;  %v1494_v62 = vpop.eup %1493 }
 0x836   :  { %v1076_v9 = vsub.f32 1.0, %v1494_v62  ;;  %v1078_v12 = vmul.f32 %v1494_v62, %v967_v11 }
 0x837   :  { %v1074_v61 = vadd.f32 %v1073_v60, %v1057_v57 }
 0x839   :  { %1495 = vtanh.f32 %v1074_v61 }
 0x843   :  { %v1496_v2 = vpop.eup %1495 }
 0x844   :  { %v1077_v63 = vmul.f32 %v1496_v2, %v1076_v9 }
 0x846   :  { %v1079_v25 = vadd.f32 %v1078_v12, %v1077_v63 }
 0x848   :  { %1148 = vst [vmem:[%s2075_s3 + $0x38] sm:$0xff] %v1079_v25 }

</bundles_post_ra>
